<compile_context>
chip_gen: v7x
topology: tpu7x:2x2x1
jax: 0.10.0
libtpu: 0.0.40
codegen_flags: <defaults>
</compile_context>

<pallas_src>
import functools

import jax
import jax.numpy as jnp
from jax.experimental import pallas as pl
from jax.experimental.pallas import tpu as pltpu


def _softplus(x):
    # numerically stable softplus, matches torch.nn.Softplus (beta=1)
    return jnp.maximum(x, 0.0) + jnp.log1p(jnp.exp(-jnp.abs(x)))


def _round_up(x, m):
    return (x + m - 1) // m * m


def donut_kernel(x_ref,
                 ew1_ref, eb1_ref, ew2_ref, eb2_ref,
                 dw1_ref, db1_ref, dw2_ref, db2_ref,
                 enc_ref, dec_ref,
                 *, latent_dim, input_dim, lz_pad, compute_dtype):
    cd = compute_dtype
    x = x_ref[...]                                              # (tb, in_p), already compute_dtype

    # ----- encoder: Linear(In,H) -> ReLU -> joint head Linear(H, 2L) -----
    h = jnp.dot(x, ew1_ref[...], preferred_element_type=jnp.float32) + eb1_ref[...]
    h = jnp.maximum(h, 0.0).astype(cd)

    enc = jnp.dot(h, ew2_ref[...], preferred_element_type=jnp.float32) + eb2_ref[...]
    lane_e = jax.lax.broadcasted_iota(jnp.int32, enc.shape, 1)
    # lanes [0, L) = mean_z, lanes [L, 2L) = softplus -> std_z, rest = padding
    enc_ref[...] = jnp.where(lane_e >= latent_dim, _softplus(enc), enc).astype(enc_ref.dtype)

    # eval mode: z_sample = z_mu.  Lanes >= latent_dim of `enc` hit the
    # zero-padded rows of dw1, so they contribute nothing to the decoder.
    z = enc[:, :lz_pad].astype(cd)

    # ----- decoder: Linear(L,H) -> ReLU -> joint head Linear(H, 2*In) -----
    g = jnp.dot(z, dw1_ref[...], preferred_element_type=jnp.float32) + db1_ref[...]
    g = jnp.maximum(g, 0.0).astype(cd)

    dec = jnp.dot(g, dw2_ref[...], preferred_element_type=jnp.float32) + db2_ref[...]
    lane_d = jax.lax.broadcasted_iota(jnp.int32, dec.shape, 1)
    # lanes [0, In) = mean_x, lanes [In, 2*In) = softplus -> std_x, rest = padding
    dec_ref[...] = jnp.where(lane_d >= input_dim, _softplus(dec), dec).astype(dec_ref.dtype)


def donut_forward(inputs, params, latent_dim, *, block_rows=1024,
                  compute_dtype=jnp.bfloat16, out_dtype=jnp.float32,
                  single_buffer_weights=True):
    """inputs: (B, T, D) float32.  Returns (mean_z, std_z, mean_x, std_x, sample_z, mask).

    compute_dtype: dtype of the matmul operands (accumulation is always f32).
      bfloat16 (default) is MXU-native on v5e/v6e/v7x and halves weight DMA;
      use jnp.float32 for exact PyTorch-parity numerics.
    out_dtype: dtype of the kernel HBM writeback (bfloat16 halves output bytes).
    """
    B, T, D = inputs.shape
    input_dim = T * D
    x = inputs.reshape(B, input_dim).astype(jnp.float32)

    ew1, eb1, ew2, eb2, dw1, db1, dw2, db2 = params
    hidden_dim = ew1.shape[1]

    # Padded feature dims (all multiples of 128 -> MXU/lane friendly).
    in_p = _round_up(input_dim, 128)          # encoder input width
    h_p = _round_up(hidden_dim, 128)          # hidden width
    zl_p = _round_up(2 * latent_dim, 128)     # joint encoder-head width [mu|sigma]
    lz_p = _round_up(latent_dim, 128)         # decoder input (latent) width
    zx_p = _round_up(2 * input_dim, 128)      # joint decoder-head width [mu|sigma]

    # Batch tiling: multiple of 16 rows (bf16 sublane-pack safe); prefer >= 2
    # grid steps when the batch allows it so both v7x TensorCores get work.
    row_align = 16
    b_rows = _round_up(B, row_align)
    tb = min(_round_up(block_rows, row_align), b_rows)
    if b_rows > row_align and tb >= b_rows:
        tb = _round_up(b_rows // 2, row_align)
    tb = max(tb, row_align)
    b_p = _round_up(B, tb)
    grid = (b_p // tb,)

    def pad2(a, r, c):
        return jnp.pad(a, ((0, r - a.shape[0]), (0, c - a.shape[1])))

    cd = compute_dtype
    # x and weight matrices pre-cast to compute_dtype (review item 1);
    # biases stay f32 (added to the f32 accumulator).
    x_p = pad2(x, b_p, in_p).astype(cd)
    ew1_p = pad2(ew1, in_p, h_p).astype(cd)
    eb1_p = pad2(eb1, 1, h_p)
    ew2_p = pad2(ew2, h_p, zl_p).astype(cd)      # joint [mu|sigma] head, one matmul
    eb2_p = pad2(eb2, 1, zl_p)
    dw1_p = pad2(dw1, lz_p, h_p).astype(cd)
    db1_p = pad2(db1, 1, h_p)
    dw2_p = pad2(dw2, h_p, zx_p).astype(cd)      # joint [mu|sigma] head, one matmul
    db2_p = pad2(db2, 1, zx_p)

    # Explicit VMEM budget (conservatively assume double-buffered weights).
    cd_size = jnp.dtype(cd).itemsize
    od_size = jnp.dtype(out_dtype).itemsize
    w_bytes = (in_p * h_p + h_p * zl_p + lz_p * h_p + h_p * zx_p) * cd_size
    b_bytes = (2 * h_p + zl_p + zx_p) * 4
    tile_bytes = tb * (in_p * cd_size + (zl_p + zx_p) * od_size)
    scratch_bytes = tb * (2 * h_p + zl_p + zx_p + lz_p) * 4
    vmem_est = 2 * (w_bytes + b_bytes) + 2 * tile_bytes + scratch_bytes + (4 << 20)
    vmem_limit = int(min(128 * 1024 * 1024, max(32 * 1024 * 1024, vmem_est)))

    kernel = functools.partial(
        donut_kernel,
        latent_dim=latent_dim, input_dim=input_dim, lz_pad=lz_p,
        compute_dtype=cd)

    out_shapes = (
        jax.ShapeDtypeStruct((b_p, zl_p), out_dtype),   # [mean_z | std_z] (padded)
        jax.ShapeDtypeStruct((b_p, zx_p), out_dtype),   # [mean_x | std_x] (padded, flat)
    )

    def make_call(use_single_buffer):
        def resident(shape):
            if use_single_buffer:
                # Constant index_map already skips re-fetch; single-buffer the
                # weights so double-buffering doesn't burn VMEM.
                return pl.BlockSpec(shape, lambda i: (0, 0),
                                    pipeline_mode=pl.Buffered(buffer_count=1))
            return pl.BlockSpec(shape, lambda i: (0, 0))

        batch_spec = lambda cols: pl.BlockSpec((tb, cols), lambda i: (i, 0))
        in_specs = [
            batch_spec(in_p),
            resident((in_p, h_p)), resident((1, h_p)),
            resident((h_p, zl_p)), resident((1, zl_p)),
            resident((lz_p, h_p)), resident((1, h_p)),
            resident((h_p, zx_p)), resident((1, zx_p)),
        ]
        out_specs = (batch_spec(zl_p), batch_spec(zx_p))
        return pl.pallas_call(
            kernel,
            grid=grid,
            out_shape=out_shapes,
            in_specs=in_specs,
            out_specs=out_specs,
            compiler_params=pltpu.CompilerParams(
                dimension_semantics=("parallel",),
                vmem_limit_bytes=vmem_limit),
        )

    args = (x_p, ew1_p, eb1_p, ew2_p, eb2_p, dw1_p, db1_p, dw2_p, db2_p)
    if single_buffer_weights:
        try:
            enc_p, dec_p = make_call(True)(*args)
        except Exception:
            # JAX version without BlockSpec.pipeline_mode / Buffered(1):
            # fall back to default double-buffered resident weights.
            enc_p, dec_p = make_call(False)(*args)
    else:
        enc_p, dec_p = make_call(False)(*args)

    mean_z = enc_p[:B, :latent_dim]
    std_z = enc_p[:B, latent_dim:2 * latent_dim]
    mean_x = dec_p[:B, :input_dim].reshape(B, T, D)
    std_x = dec_p[:B, input_dim:2 * input_dim].reshape(B, T, D)
    sample_z = mean_z          # eval mode: z_sample == z_mu (no extra writeback)
    mask = None                # eval mode
    return mean_z, std_z, mean_x, std_x, sample_z, mask


def donut_forward_ref(inputs, params, latent_dim):
    """Pure-JAX reference of the PyTorch eval-mode forward (for sanity check)."""
    B, T, D = inputs.shape
    x = inputs.reshape(B, T * D)
    ew1, eb1, ew2, eb2, dw1, db1, dw2, db2 = params
    h = jnp.maximum(x @ ew1 + eb1, 0.0)
    enc = h @ ew2 + eb2
    mean_z, std_z = enc[:, :latent_dim], _softplus(enc[:, latent_dim:])
    z = mean_z
    g = jnp.maximum(z @ dw1 + db1, 0.0)
    dec = g @ dw2 + db2
    mean_x = dec[:, :T * D].reshape(B, T, D)
    std_x = _softplus(dec[:, T * D:]).reshape(B, T, D)
    return mean_z, std_z, mean_x, std_x, z


def init_params(key, input_dim, hidden_dim, latent_dim):
    """Deterministic init mimicking torch.nn.Linear default (uniform ±1/sqrt(fan_in)).
    Weights stored as (in_features, out_features); biases as (1, out_features)."""
    def linear(k, fan_in, fan_out):
        kw, kb = jax.random.split(k)
        bound = 1.0 / jnp.sqrt(fan_in)
        w = jax.random.uniform(kw, (fan_in, fan_out), jnp.float32, -bound, bound)
        b = jax.random.uniform(kb, (1, fan_out), jnp.float32, -bound, bound)
        return w, b

    k1, k2, k3, k4 = jax.random.split(key, 4)
    ew1, eb1 = linear(k1, input_dim, hidden_dim)          # encoder layer 1
    ew2, eb2 = linear(k2, hidden_dim, 2 * latent_dim)     # encoder head (mu|sigma)
    dw1, db1 = linear(k3, latent_dim, hidden_dim)         # decoder layer 1
    dw2, db2 = linear(k4, hidden_dim, 2 * input_dim)      # decoder head (mu|sigma)
    return (ew1, eb1, ew2, eb2, dw1, db1, dw2, db2)


if __name__ == "__main__":
    import numpy as np

    # small shapes: batch=2, window T=8, features D=4 -> input_dim = 32
    B, T, D = 2, 8, 4
    input_dim = T * D
    hidden_dim = 32
    latent_dim = 8
    mask_prob = 0.01  # unused in eval mode

    key = jax.random.PRNGKey(0)
    k_in, k_params = jax.random.split(key)
    inputs = jax.random.normal(k_in, (B, T, D), dtype=jnp.float32)
    params = init_params(k_params, input_dim, hidden_dim, latent_dim)

    r_mean_z, r_std_z, r_mean_x, r_std_x, r_z = donut_forward_ref(inputs, params, latent_dim)

    # ---- f32 operand path: exact PyTorch-parity numerics ----
    outs = donut_forward(inputs, params, latent_dim, compute_dtype=jnp.float32)
    mean_z, std_z, mean_x, std_x, sample_z, mask = outs
    jax.block_until_ready((mean_z, std_z, mean_x, std_x, sample_z))

    assert mean_z.shape == (B, latent_dim)
    assert std_z.shape == (B, latent_dim)
    assert mean_x.shape == (B, T, D)
    assert std_x.shape == (B, T, D)
    assert sample_z.shape == (B, latent_dim)
    assert mask is None

    np.testing.assert_allclose(np.asarray(mean_z), np.asarray(r_mean_z), rtol=1e-5, atol=1e-5)
    np.testing.assert_allclose(np.asarray(std_z), np.asarray(r_std_z), rtol=1e-5, atol=1e-5)
    np.testing.assert_allclose(np.asarray(mean_x), np.asarray(r_mean_x), rtol=1e-5, atol=1e-5)
    np.testing.assert_allclose(np.asarray(std_x), np.asarray(r_std_x), rtol=1e-5, atol=1e-5)
    np.testing.assert_allclose(np.asarray(sample_z), np.asarray(r_z), rtol=1e-5, atol=1e-5)

    # ---- bf16 operand path (default, MXU-native): relaxed tolerance ----
    b_mean_z, b_std_z, b_mean_x, b_std_x, b_sample_z, _ = donut_forward(inputs, params, latent_dim)
    jax.block_until_ready((b_mean_z, b_std_z, b_mean_x, b_std_x, b_sample_z))
    assert b_mean_z.shape == (B, latent_dim) and b_mean_x.shape == (B, T, D)
    for got, want in ((b_mean_z, r_mean_z), (b_std_z, r_std_z),
                      (b_mean_x, r_mean_x), (b_std_x, r_std_x)):
        g = np.asarray(got)
        assert np.all(np.isfinite(g))
        np.testing.assert_allclose(g, np.asarray(want), rtol=1e-1, atol=1e-1)

    print("KERNEL_OK")
</pallas_src>

<mosaic_0001>
module attributes {stable_mosaic.version = 11 : i64} {
  func.func @donut_kernel(%arg0: i32, %arg1: memref<16x128xf32, #tpu.memory_space<vmem>>, %arg2: memref<128x128xf32, #tpu.memory_space<vmem>>, %arg3: memref<1x128xf32, #tpu.memory_space<vmem>>, %arg4: memref<128x128xf32, #tpu.memory_space<vmem>>, %arg5: memref<1x128xf32, #tpu.memory_space<vmem>>, %arg6: memref<128x128xf32, #tpu.memory_space<vmem>>, %arg7: memref<1x128xf32, #tpu.memory_space<vmem>>, %arg8: memref<128x128xf32, #tpu.memory_space<vmem>>, %arg9: memref<1x128xf32, #tpu.memory_space<vmem>>, %arg10: memref<16x128xf32, #tpu.memory_space<vmem>>, %arg11: memref<16x128xf32, #tpu.memory_space<vmem>>) attributes {dimension_semantics = [#tpu.dimension_semantics<parallel>], iteration_bounds = array<i64: 1>, scalar_prefetch = 0 : i64, scratch_operands = 0 : i64, tpu.core_type = #tpu.core_type<tc>, window_params = [{transform_indices = @transform_0, window_bounds = array<i64: 16, 128>}, {pipeline_mode = #tpu.pipeline_mode<synchronous>, transform_indices = @transform_1, window_bounds = array<i64: 128, 128>}, {pipeline_mode = #tpu.pipeline_mode<synchronous>, transform_indices = @transform_2, window_bounds = array<i64: 1, 128>}, {pipeline_mode = #tpu.pipeline_mode<synchronous>, transform_indices = @transform_3, window_bounds = array<i64: 128, 128>}, {pipeline_mode = #tpu.pipeline_mode<synchronous>, transform_indices = @transform_4, window_bounds = array<i64: 1, 128>}, {pipeline_mode = #tpu.pipeline_mode<synchronous>, transform_indices = @transform_5, window_bounds = array<i64: 128, 128>}, {pipeline_mode = #tpu.pipeline_mode<synchronous>, transform_indices = @transform_6, window_bounds = array<i64: 1, 128>}, {pipeline_mode = #tpu.pipeline_mode<synchronous>, transform_indices = @transform_7, window_bounds = array<i64: 128, 128>}, {pipeline_mode = #tpu.pipeline_mode<synchronous>, transform_indices = @transform_8, window_bounds = array<i64: 1, 128>}, {transform_indices = @transform_9, window_bounds = array<i64: 16, 128>}, {transform_indices = @transform_10, window_bounds = array<i64: 16, 128>}]} {
    %c0 = arith.constant 0 : index
    %c0_0 = arith.constant 0 : index
    %0 = vector.load %arg1[%c0, %c0_0] : memref<16x128xf32, #tpu.memory_space<vmem>>, vector<16x128xf32>
    %c0_1 = arith.constant 0 : index
    %c0_2 = arith.constant 0 : index
    %1 = vector.load %arg2[%c0_1, %c0_2] : memref<128x128xf32, #tpu.memory_space<vmem>>, vector<128x128xf32>
    %cst = arith.constant dense<0.000000e+00> : vector<16x128xf32>
    %2 = tpu.matmul %0, %1, %cst {dimension_numbers = #tpu.dot_dimension_numbers<[1], [0], [0], [1], [0, 0, 1, 1], [], []>} : vector<16x128xf32>, vector<128x128xf32>, vector<16x128xf32> -> vector<16x128xf32>
    %c0_3 = arith.constant 0 : index
    %c0_4 = arith.constant 0 : index
    %3 = vector.load %arg3[%c0_3, %c0_4] : memref<1x128xf32, #tpu.memory_space<vmem>>, vector<1x128xf32>
    %4 = vector.broadcast %3 : vector<1x128xf32> to vector<16x128xf32>
    %5 = arith.addf %2, %4 : vector<16x128xf32>
    %cst_5 = arith.constant 0.000000e+00 : f32
    %6 = vector.broadcast %cst_5 : f32 to vector<16x128xf32>
    %7 = arith.maximumf %5, %6 : vector<16x128xf32>
    %c0_6 = arith.constant 0 : index
    %c0_7 = arith.constant 0 : index
    %8 = vector.load %arg4[%c0_6, %c0_7] : memref<128x128xf32, #tpu.memory_space<vmem>>, vector<128x128xf32>
    %cst_8 = arith.constant dense<0.000000e+00> : vector<16x128xf32>
    %9 = tpu.matmul %7, %8, %cst_8 {dimension_numbers = #tpu.dot_dimension_numbers<[1], [0], [0], [1], [0, 0, 1, 1], [], []>} : vector<16x128xf32>, vector<128x128xf32>, vector<16x128xf32> -> vector<16x128xf32>
    %c0_9 = arith.constant 0 : index
    %c0_10 = arith.constant 0 : index
    %10 = vector.load %arg5[%c0_9, %c0_10] : memref<1x128xf32, #tpu.memory_space<vmem>>, vector<1x128xf32>
    %11 = vector.broadcast %10 : vector<1x128xf32> to vector<16x128xf32>
    %12 = arith.addf %9, %11 : vector<16x128xf32>
    %13 = tpu.iota {dimensions = array<i32: 1>} : vector<16x128xi32>
    %c8_i32 = arith.constant 8 : i32
    %14 = vector.broadcast %c8_i32 : i32 to vector<16x128xi32>
    %15 = arith.cmpi sge, %13, %14 : vector<16x128xi32>
    %cst_11 = arith.constant 0.000000e+00 : f32
    %16 = vector.broadcast %cst_11 : f32 to vector<16x128xf32>
    %17 = arith.maximumf %12, %16 : vector<16x128xf32>
    %18 = math.absf %12 : vector<16x128xf32>
    %cst_12 = arith.constant 0.000000e+00 : f32
    %19 = vector.broadcast %cst_12 : f32 to vector<16x128xf32>
    %20 = arith.subf %19, %18 : vector<16x128xf32>
    %21 = math.exp %20 : vector<16x128xf32>
    %22 = math.log1p %21 : vector<16x128xf32>
    %23 = arith.addf %17, %22 : vector<16x128xf32>
    %24 = arith.select %15, %23, %12 : vector<16x128xi1>, vector<16x128xf32>
    %c0_13 = arith.constant 0 : index
    %c0_14 = arith.constant 0 : index
    %25 = vector.load %arg10[%c0_13, %c0_14] : memref<16x128xf32, #tpu.memory_space<vmem>>, vector<16x128xf32>
    tpu.vector_store %arg10[%c0_13, %c0_14], %24 {strides = array<i32>} : memref<16x128xf32, #tpu.memory_space<vmem>>, vector<16x128xf32>,
    %c0_15 = arith.constant 0 : index
    %c0_16 = arith.constant 0 : index
    %26 = vector.load %arg6[%c0_15, %c0_16] : memref<128x128xf32, #tpu.memory_space<vmem>>, vector<128x128xf32>
    %cst_17 = arith.constant dense<0.000000e+00> : vector<16x128xf32>
    %27 = tpu.matmul %12, %26, %cst_17 {dimension_numbers = #tpu.dot_dimension_numbers<[1], [0], [0], [1], [0, 0, 1, 1], [], []>} : vector<16x128xf32>, vector<128x128xf32>, vector<16x128xf32> -> vector<16x128xf32>
    %c0_18 = arith.constant 0 : index
    %c0_19 = arith.constant 0 : index
    %28 = vector.load %arg7[%c0_18, %c0_19] : memref<1x128xf32, #tpu.memory_space<vmem>>, vector<1x128xf32>
    %29 = vector.broadcast %28 : vector<1x128xf32> to vector<16x128xf32>
    %30 = arith.addf %27, %29 : vector<16x128xf32>
    %cst_20 = arith.constant 0.000000e+00 : f32
    %31 = vector.broadcast %cst_20 : f32 to vector<16x128xf32>
    %32 = arith.maximumf %30, %31 : vector<16x128xf32>
    %c0_21 = arith.constant 0 : index
    %c0_22 = arith.constant 0 : index
    %33 = vector.load %arg8[%c0_21, %c0_22] : memref<128x128xf32, #tpu.memory_space<vmem>>, vector<128x128xf32>
    %cst_23 = arith.constant dense<0.000000e+00> : vector<16x128xf32>
    %34 = tpu.matmul %32, %33, %cst_23 {dimension_numbers = #tpu.dot_dimension_numbers<[1], [0], [0], [1], [0, 0, 1, 1], [], []>} : vector<16x128xf32>, vector<128x128xf32>, vector<16x128xf32> -> vector<16x128xf32>
    %c0_24 = arith.constant 0 : index
    %c0_25 = arith.constant 0 : index
    %35 = vector.load %arg9[%c0_24, %c0_25] : memref<1x128xf32, #tpu.memory_space<vmem>>, vector<1x128xf32>
    %36 = vector.broadcast %35 : vector<1x128xf32> to vector<16x128xf32>
    %37 = arith.addf %34, %36 : vector<16x128xf32>
    %38 = tpu.iota {dimensions = array<i32: 1>} : vector<16x128xi32>
    %c32_i32 = arith.constant 32 : i32
    %39 = vector.broadcast %c32_i32 : i32 to vector<16x128xi32>
    %40 = arith.cmpi sge, %38, %39 : vector<16x128xi32>
    %cst_26 = arith.constant 0.000000e+00 : f32
    %41 = vector.broadcast %cst_26 : f32 to vector<16x128xf32>
    %42 = arith.maximumf %37, %41 : vector<16x128xf32>
    %43 = math.absf %37 : vector<16x128xf32>
    %cst_27 = arith.constant 0.000000e+00 : f32
    %44 = vector.broadcast %cst_27 : f32 to vector<16x128xf32>
    %45 = arith.subf %44, %43 : vector<16x128xf32>
    %46 = math.exp %45 : vector<16x128xf32>
    %47 = math.log1p %46 : vector<16x128xf32>
    %48 = arith.addf %42, %47 : vector<16x128xf32>
    %49 = arith.select %40, %48, %37 : vector<16x128xi1>, vector<16x128xf32>
    %c0_28 = arith.constant 0 : index
    %c0_29 = arith.constant 0 : index
    %50 = vector.load %arg11[%c0_28, %c0_29] : memref<16x128xf32, #tpu.memory_space<vmem>>, vector<16x128xf32>
    tpu.vector_store %arg11[%c0_28, %c0_29], %49 {strides = array<i32>} : memref<16x128xf32, #tpu.memory_space<vmem>>, vector<16x128xf32>,
    return
  }
  func.func @transform_0(%arg0: i32) -> (i32, i32) {
    %c0_i32 = arith.constant 0 : i32
    %c0_i32_0 = arith.constant 0 : i32
    return %arg0, %c0_i32 : i32, i32
  }
  func.func @transform_1(%arg0: i32) -> (i32, i32) {
    %c0_i32 = arith.constant 0 : i32
    %c0_i32_0 = arith.constant 0 : i32
    %c0_i32_1 = arith.constant 0 : i32
    return %c0_i32, %c0_i32_0 : i32, i32
  }
  func.func @transform_2(%arg0: i32) -> (i32, i32) {
    %c0_i32 = arith.constant 0 : i32
    %c0_i32_0 = arith.constant 0 : i32
    %c0_i32_1 = arith.constant 0 : i32
    return %c0_i32, %c0_i32_0 : i32, i32
  }
  func.func @transform_3(%arg0: i32) -> (i32, i32) {
    %c0_i32 = arith.constant 0 : i32
    %c0_i32_0 = arith.constant 0 : i32
    %c0_i32_1 = arith.constant 0 : i32
    return %c0_i32, %c0_i32_0 : i32, i32
  }
  func.func @transform_4(%arg0: i32) -> (i32, i32) {
    %c0_i32 = arith.constant 0 : i32
    %c0_i32_0 = arith.constant 0 : i32
    %c0_i32_1 = arith.constant 0 : i32
    return %c0_i32, %c0_i32_0 : i32, i32
  }
  func.func @transform_5(%arg0: i32) -> (i32, i32) {
    %c0_i32 = arith.constant 0 : i32
    %c0_i32_0 = arith.constant 0 : i32
    %c0_i32_1 = arith.constant 0 : i32
    return %c0_i32, %c0_i32_0 : i32, i32
  }
  func.func @transform_6(%arg0: i32) -> (i32, i32) {
    %c0_i32 = arith.constant 0 : i32
    %c0_i32_0 = arith.constant 0 : i32
    %c0_i32_1 = arith.constant 0 : i32
    return %c0_i32, %c0_i32_0 : i32, i32
  }
  func.func @transform_7(%arg0: i32) -> (i32, i32) {
    %c0_i32 = arith.constant 0 : i32
    %c0_i32_0 = arith.constant 0 : i32
    %c0_i32_1 = arith.constant 0 : i32
    return %c0_i32, %c0_i32_0 : i32, i32
  }
  func.func @transform_8(%arg0: i32) -> (i32, i32) {
    %c0_i32 = arith.constant 0 : i32
    %c0_i32_0 = arith.constant 0 : i32
    %c0_i32_1 = arith.constant 0 : i32
    return %c0_i32, %c0_i32_0 : i32, i32
  }
  func.func @transform_9(%arg0: i32) -> (i32, i32) {
    %c0_i32 = arith.constant 0 : i32
    %c0_i32_0 = arith.constant 0 : i32
    return %arg0, %c0_i32 : i32, i32
  }
  func.func @transform_10(%arg0: i32) -> (i32, i32) {
    %c0_i32 = arith.constant 0 : i32
    %c0_i32_0 = arith.constant 0 : i32
    return %arg0, %c0_i32 : i32, i32
  }
}

module attributes {stable_mosaic.version = 11 : i64} {
  func.func @donut_kernel(%arg0: i32, %arg1: memref<16x128xf32, #tpu.memory_space<vmem>>, %arg2: memref<128x128xf32, #tpu.memory_space<vmem>>, %arg3: memref<1x128xf32, #tpu.memory_space<vmem>>, %arg4: memref<128x128xf32, #tpu.memory_space<vmem>>, %arg5: memref<1x128xf32, #tpu.memory_space<vmem>>, %arg6: memref<128x128xf32, #tpu.memory_space<vmem>>, %arg7: memref<1x128xf32, #tpu.memory_space<vmem>>, %arg8: memref<128x128xf32, #tpu.memory_space<vmem>>, %arg9: memref<1x128xf32, #tpu.memory_space<vmem>>, %arg10: memref<16x128xf32, #tpu.memory_space<vmem>>, %arg11: memref<16x128xf32, #tpu.memory_space<vmem>>) attributes {dimension_semantics = [#tpu.dimension_semantics<parallel>], iteration_bounds = array<i64: 1>, scalar_prefetch = 0 : i64, scratch_operands = 0 : i64, tpu.core_type = #tpu.core_type<tc>, window_params = [{transform_indices = @transform_0, window_bounds = array<i64: 16, 128>}, {pipeline_mode = #tpu.pipeline_mode<synchronous>, transform_indices = @transform_1, window_bounds = array<i64: 128, 128>}, {pipeline_mode = #tpu.pipeline_mode<synchronous>, transform_indices = @transform_2, window_bounds = array<i64: 1, 128>}, {pipeline_mode = #tpu.pipeline_mode<synchronous>, transform_indices = @transform_3, window_bounds = array<i64: 128, 128>}, {pipeline_mode = #tpu.pipeline_mode<synchronous>, transform_indices = @transform_4, window_bounds = array<i64: 1, 128>}, {pipeline_mode = #tpu.pipeline_mode<synchronous>, transform_indices = @transform_5, window_bounds = array<i64: 128, 128>}, {pipeline_mode = #tpu.pipeline_mode<synchronous>, transform_indices = @transform_6, window_bounds = array<i64: 1, 128>}, {pipeline_mode = #tpu.pipeline_mode<synchronous>, transform_indices = @transform_7, window_bounds = array<i64: 128, 128>}, {pipeline_mode = #tpu.pipeline_mode<synchronous>, transform_indices = @transform_8, window_bounds = array<i64: 1, 128>}, {transform_indices = @transform_9, window_bounds = array<i64: 16, 128>}, {transform_indices = @transform_10, window_bounds = array<i64: 16, 128>}]} {
    %c0 = arith.constant 0 : index
    %c0_0 = arith.constant 0 : index
    %0 = vector.load %arg1[%c0, %c0_0] : memref<16x128xf32, #tpu.memory_space<vmem>>, vector<16x128xf32>
    %c0_1 = arith.constant 0 : index
    %c0_2 = arith.constant 0 : index
    %1 = vector.load %arg2[%c0_1, %c0_2] : memref<128x128xf32, #tpu.memory_space<vmem>>, vector<128x128xf32>
    %cst = arith.constant dense<0.000000e+00> : vector<16x128xf32>
    %2 = tpu.matmul %0, %1, %cst {dimension_numbers = #tpu.dot_dimension_numbers<[1], [0], [0], [1], [0, 0, 1, 1], [], []>} : vector<16x128xf32>, vector<128x128xf32>, vector<16x128xf32> -> vector<16x128xf32>
    %c0_3 = arith.constant 0 : index
    %c0_4 = arith.constant 0 : index
    %3 = vector.load %arg3[%c0_3, %c0_4] : memref<1x128xf32, #tpu.memory_space<vmem>>, vector<1x128xf32>
    %4 = vector.broadcast %3 : vector<1x128xf32> to vector<16x128xf32>
    %5 = arith.addf %2, %4 : vector<16x128xf32>
    %cst_5 = arith.constant 0.000000e+00 : f32
    %6 = vector.broadcast %cst_5 : f32 to vector<16x128xf32>
    %7 = arith.maximumf %5, %6 : vector<16x128xf32>
    %c0_6 = arith.constant 0 : index
    %c0_7 = arith.constant 0 : index
    %8 = vector.load %arg4[%c0_6, %c0_7] : memref<128x128xf32, #tpu.memory_space<vmem>>, vector<128x128xf32>
    %cst_8 = arith.constant dense<0.000000e+00> : vector<16x128xf32>
    %9 = tpu.matmul %7, %8, %cst_8 {dimension_numbers = #tpu.dot_dimension_numbers<[1], [0], [0], [1], [0, 0, 1, 1], [], []>} : vector<16x128xf32>, vector<128x128xf32>, vector<16x128xf32> -> vector<16x128xf32>
    %c0_9 = arith.constant 0 : index
    %c0_10 = arith.constant 0 : index
    %10 = vector.load %arg5[%c0_9, %c0_10] : memref<1x128xf32, #tpu.memory_space<vmem>>, vector<1x128xf32>
    %11 = vector.broadcast %10 : vector<1x128xf32> to vector<16x128xf32>
    %12 = arith.addf %9, %11 : vector<16x128xf32>
    %13 = tpu.iota {dimensions = array<i32: 1>} : vector<16x128xi32>
    %c8_i32 = arith.constant 8 : i32
    %14 = vector.broadcast %c8_i32 : i32 to vector<16x128xi32>
    %15 = arith.cmpi sge, %13, %14 : vector<16x128xi32>
    %cst_11 = arith.constant 0.000000e+00 : f32
    %16 = vector.broadcast %cst_11 : f32 to vector<16x128xf32>
    %17 = arith.maximumf %12, %16 : vector<16x128xf32>
    %18 = math.absf %12 : vector<16x128xf32>
    %cst_12 = arith.constant 0.000000e+00 : f32
    %19 = vector.broadcast %cst_12 : f32 to vector<16x128xf32>
    %20 = arith.subf %19, %18 : vector<16x128xf32>
    %21 = math.exp %20 : vector<16x128xf32>
    %22 = math.log1p %21 : vector<16x128xf32>
    %23 = arith.addf %17, %22 : vector<16x128xf32>
    %24 = arith.select %15, %23, %12 : vector<16x128xi1>, vector<16x128xf32>
    %c0_13 = arith.constant 0 : index
    %c0_14 = arith.constant 0 : index
    %25 = vector.load %arg10[%c0_13, %c0_14] : memref<16x128xf32, #tpu.memory_space<vmem>>, vector<16x128xf32>
    tpu.vector_store %arg10[%c0_13, %c0_14], %24 {strides = array<i32>} : memref<16x128xf32, #tpu.memory_space<vmem>>, vector<16x128xf32>,
    %c0_15 = arith.constant 0 : index
    %c0_16 = arith.constant 0 : index
    %26 = vector.load %arg6[%c0_15, %c0_16] : memref<128x128xf32, #tpu.memory_space<vmem>>, vector<128x128xf32>
    %cst_17 = arith.constant dense<0.000000e+00> : vector<16x128xf32>
    %27 = tpu.matmul %12, %26, %cst_17 {dimension_numbers = #tpu.dot_dimension_numbers<[1], [0], [0], [1], [0, 0, 1, 1], [], []>} : vector<16x128xf32>, vector<128x128xf32>, vector<16x128xf32> -> vector<16x128xf32>
    %c0_18 = arith.constant 0 : index
    %c0_19 = arith.constant 0 : index
    %28 = vector.load %arg7[%c0_18, %c0_19] : memref<1x128xf32, #tpu.memory_space<vmem>>, vector<1x128xf32>
    %29 = vector.broadcast %28 : vector<1x128xf32> to vector<16x128xf32>
    %30 = arith.addf %27, %29 : vector<16x128xf32>
    %cst_20 = arith.constant 0.000000e+00 : f32
    %31 = vector.broadcast %cst_20 : f32 to vector<16x128xf32>
    %32 = arith.maximumf %30, %31 : vector<16x128xf32>
    %c0_21 = arith.constant 0 : index
    %c0_22 = arith.constant 0 : index
    %33 = vector.load %arg8[%c0_21, %c0_22] : memref<128x128xf32, #tpu.memory_space<vmem>>, vector<128x128xf32>
    %cst_23 = arith.constant dense<0.000000e+00> : vector<16x128xf32>
    %34 = tpu.matmul %32, %33, %cst_23 {dimension_numbers = #tpu.dot_dimension_numbers<[1], [0], [0], [1], [0, 0, 1, 1], [], []>} : vector<16x128xf32>, vector<128x128xf32>, vector<16x128xf32> -> vector<16x128xf32>
    %c0_24 = arith.constant 0 : index
    %c0_25 = arith.constant 0 : index
    %35 = vector.load %arg9[%c0_24, %c0_25] : memref<1x128xf32, #tpu.memory_space<vmem>>, vector<1x128xf32>
    %36 = vector.broadcast %35 : vector<1x128xf32> to vector<16x128xf32>
    %37 = arith.addf %34, %36 : vector<16x128xf32>
    %38 = tpu.iota {dimensions = array<i32: 1>} : vector<16x128xi32>
    %c32_i32 = arith.constant 32 : i32
    %39 = vector.broadcast %c32_i32 : i32 to vector<16x128xi32>
    %40 = arith.cmpi sge, %38, %39 : vector<16x128xi32>
    %cst_26 = arith.constant 0.000000e+00 : f32
    %41 = vector.broadcast %cst_26 : f32 to vector<16x128xf32>
    %42 = arith.maximumf %37, %41 : vector<16x128xf32>
    %43 = math.absf %37 : vector<16x128xf32>
    %cst_27 = arith.constant 0.000000e+00 : f32
    %44 = vector.broadcast %cst_27 : f32 to vector<16x128xf32>
    %45 = arith.subf %44, %43 : vector<16x128xf32>
    %46 = math.exp %45 : vector<16x128xf32>
    %47 = math.log1p %46 : vector<16x128xf32>
    %48 = arith.addf %42, %47 : vector<16x128xf32>
    %49 = arith.select %40, %48, %37 : vector<16x128xi1>, vector<16x128xf32>
    %c0_28 = arith.constant 0 : index
    %c0_29 = arith.constant 0 : index
    %50 = vector.load %arg11[%c0_28, %c0_29] : memref<16x128xf32, #tpu.memory_space<vmem>>, vector<16x128xf32>
    tpu.vector_store %arg11[%c0_28, %c0_29], %49 {strides = array<i32>} : memref<16x128xf32, #tpu.memory_space<vmem>>, vector<16x128xf32>,
    return
  }
  func.func @transform_0(%arg0: i32) -> (i32, i32) {
    %c0_i32 = arith.constant 0 : i32
    %c0_i32_0 = arith.constant 0 : i32
    return %arg0, %c0_i32 : i32, i32
  }
  func.func @transform_1(%arg0: i32) -> (i32, i32) {
    %c0_i32 = arith.constant 0 : i32
    %c0_i32_0 = arith.constant 0 : i32
    %c0_i32_1 = arith.constant 0 : i32
    return %c0_i32, %c0_i32_0 : i32, i32
  }
  func.func @transform_2(%arg0: i32) -> (i32, i32) {
    %c0_i32 = arith.constant 0 : i32
    %c0_i32_0 = arith.constant 0 : i32
    %c0_i32_1 = arith.constant 0 : i32
    return %c0_i32, %c0_i32_0 : i32, i32
  }
  func.func @transform_3(%arg0: i32) -> (i32, i32) {
    %c0_i32 = arith.constant 0 : i32
    %c0_i32_0 = arith.constant 0 : i32
    %c0_i32_1 = arith.constant 0 : i32
    return %c0_i32, %c0_i32_0 : i32, i32
  }
  func.func @transform_4(%arg0: i32) -> (i32, i32) {
    %c0_i32 = arith.constant 0 : i32
    %c0_i32_0 = arith.constant 0 : i32
    %c0_i32_1 = arith.constant 0 : i32
    return %c0_i32, %c0_i32_0 : i32, i32
  }
  func.func @transform_5(%arg0: i32) -> (i32, i32) {
    %c0_i32 = arith.constant 0 : i32
    %c0_i32_0 = arith.constant 0 : i32
    %c0_i32_1 = arith.constant 0 : i32
    return %c0_i32, %c0_i32_0 : i32, i32
  }
  func.func @transform_6(%arg0: i32) -> (i32, i32) {
    %c0_i32 = arith.constant 0 : i32
    %c0_i32_0 = arith.constant 0 : i32
    %c0_i32_1 = arith.constant 0 : i32
    return %c0_i32, %c0_i32_0 : i32, i32
  }
  func.func @transform_7(%arg0: i32) -> (i32, i32) {
    %c0_i32 = arith.constant 0 : i32
    %c0_i32_0 = arith.constant 0 : i32
    %c0_i32_1 = arith.constant 0 : i32
    return %c0_i32, %c0_i32_0 : i32, i32
  }
  func.func @transform_8(%arg0: i32) -> (i32, i32) {
    %c0_i32 = arith.constant 0 : i32
    %c0_i32_0 = arith.constant 0 : i32
    %c0_i32_1 = arith.constant 0 : i32
    return %c0_i32, %c0_i32_0 : i32, i32
  }
  func.func @transform_9(%arg0: i32) -> (i32, i32) {
    %c0_i32 = arith.constant 0 : i32
    %c0_i32_0 = arith.constant 0 : i32
    return %arg0, %c0_i32 : i32, i32
  }
  func.func @transform_10(%arg0: i32) -> (i32, i32) {
    %c0_i32 = arith.constant 0 : i32
    %c0_i32_0 = arith.constant 0 : i32
    return %arg0, %c0_i32 : i32, i32
  }
}

</mosaic_0001>

<bundles_post_ra>
// kernel: tpu_custom_call.1
= control target key start
LH: loop header
LB: loop body
LE: loop exit
PB: predicated region body
PF: predicated region fallthrough
CT: control target
= control target key end

     0   :  { %16 = vsyncpa [#allocation3], 0  ;;  %s1341_s0 = inlined_call_operand.hbm [shape: f32[16,128], index: 0, kind: input, shape index: {}]   ;;  %s1342_s1 = inlined_call_operand.hbm [shape: f32[128,128], index: 1, kind: input, shape index: {}]   ;;  %s1343_s2 = inlined_call_operand.vmem [shape: f32[1,128], index: 2, kind: input, shape index: {}]   ;;  %s1344_s3 = inlined_call_operand.hbm [shape: f32[128,128], index: 3, kind: input, shape index: {}]   ;;  %s1345_s4 = inlined_call_operand.vmem [shape: f32[1,128], index: 4, kind: input, shape index: {}]   ;;  %s1346_s5 = inlined_call_operand.hbm [shape: f32[128,128], index: 5, kind: input, shape index: {}]   ;;  %s1347_s6 = inlined_call_operand.vmem [shape: f32[1,128], index: 6, kind: input, shape index: {}]   ;;  %s1348_s7 = inlined_call_operand.hbm [shape: f32[128,128], index: 7, kind: input, shape index: {}]   ;;  %s1349_s8 = inlined_call_operand.vmem [shape: f32[1,128], index: 8, kind: input, shape index: {}]   ;;  %s1350_s9 = inlined_call_operand.hbm [shape: f32[16,128], index: 9, kind: output, shape index: {0}]   ;;  %s1351_s10 = inlined_call_operand.hbm [shape: f32[16,128], index: 10, kind: output, shape index: {1}]  }
   0x1   :  { %17 = vsyncpa [#allocation6], 0 }
   0x2   :  { %18 = vsyncpa [#allocation9], 0 }
   0x3   :  { %19 = vsyncpa [#allocation4], 0 }
   0x4   :  { %20 = vsyncpa [#allocation13], 0  ;;  %s1142_s13 = smov [#allocation5]   ;;  %s1143_s15 = smov [#allocation8]  }
   0x5   :  { %s38_s14 = sshll.u32 %s1142_s13, 4  ;;  %s66_s16 = sshll.u32 %s1143_s15, 4  ;;  %s39_s14 = int_to_ptr.vmem [resolvable:$true] %s38_s14  ;;  %s1206_s16 = int_to_ptr.vmem [resolvable:$true] %s66_s16 }
   0x6   :  { %s978_s19 = scalar_lea.hbm %s1342_s1, 2048 }
   0x7   :  { %p979_p0 = scmp.ne.s32.totalorder %s1342_s1, %s978_s19  ;;  %p982_p1 = scmp.lt.u32.totalorder %s978_s19, %s1342_s1 }
   0x9   :  { %p984_p2 = pnand %p982_p1, %p979_p0 }
   0xb   :  { %987 = shalt.err (!%p984_p2)
}
   0xc   :  { %s988_s24 = scalar_lea.vmem %s39_s14, 2048  ;;  %p993_p4 = scmp.lt.s32.totalorder %s39_s14, %s39_s14 }
   0xd   :  { %p989_p3 = scmp.ne.s32.totalorder %s39_s14, %s988_s24  ;;  %p994_p5 = scmp.lt.s32.totalorder %s988_s24, %s988_s24 }
   0xf   :  { %p995_p6 = por %p994_p5, %p993_p4 }
  0x11   :  { %p996_p7 = pnand %p995_p6, %p989_p3 }
  0x13   :  { %999 = shalt.err (!%p996_p7)
}
  0x14   :  { %s1144_s25 = smov 128   ;;  %s1145_s26 = smov 8  }
  0x15   :  { %44 = dma.hbm_to_vmem [thread:$0]  %s1342_s1, 2048, %s39_s14, [#allocation6], %s1144_s25, %s1144_s25, %s1145_s26  }
  0x16   :  { %s1000_s11 = scalar_lea.hbm %s1346_s5, 2048 }
  0x17   :  { %p1001_p8 = scmp.ne.s32.totalorder %s1346_s5, %s1000_s11  ;;  %p1004_p9 = scmp.lt.u32.totalorder %s1000_s11, %s1346_s5 }
  0x19   :  { %p1006_p10 = pnand %p1004_p9, %p1001_p8 }
  0x1b   :  { %1009 = shalt.err (!%p1006_p10)
}
  0x1c   :  { %s1010_s18 = scalar_lea.vmem %s1206_s16, 2048  ;;  %p1015_p12 = scmp.lt.s32.totalorder %s1206_s16, %s1206_s16 }
  0x1d   :  { %p1011_p11 = scmp.ne.s32.totalorder %s1206_s16, %s1010_s18  ;;  %p1016_p13 = scmp.lt.s32.totalorder %s1010_s18, %s1010_s18 }
  0x1f   :  { %p1017_p0 = por %p1016_p13, %p1015_p12 }
  0x21   :  { %p1018_p1 = pnand %p1017_p0, %p1011_p11 }
  0x23   :  { %1021 = shalt.err (!%p1018_p1)
}
  0x24   :  { %72 = dma.hbm_to_vmem [thread:$0]  %s1346_s5, 2048, %s1206_s16, [#allocation9], %s1144_s25, %s1144_s25, %s1145_s26  }
  0x25   :  { %s1146_s19 = smov [#allocation2]   ;;  %s1147_s21 = smov [#allocation7]  }
  0x26   :  { %s26_s20 = sshll.u32 %s1146_s19, 4  ;;  %s52_s22 = sshll.u32 %s1147_s21, 4  ;;  %s27_s20 = int_to_ptr.vmem [resolvable:$true] %s26_s20  ;;  %s1243_s22 = int_to_ptr.vmem [resolvable:$true] %s52_s22 }
  0x27   :  { %s1022_s27 = scalar_lea.hbm %s1341_s0, 256 }
  0x28   :  { %p1023_p2 = scmp.ne.s32.totalorder %s1341_s0, %s1022_s27  ;;  %p1026_p3 = scmp.lt.u32.totalorder %s1022_s27, %s1341_s0 }
  0x2a   :  { %p1028_p4 = pnand %p1026_p3, %p1023_p2 }
  0x2c   :  { %1031 = shalt.err (!%p1028_p4)
}
  0x2d   :  { %s1032_s5 = scalar_lea.vmem %s27_s20, 256  ;;  %p1037_p6 = scmp.lt.s32.totalorder %s27_s20, %s27_s20 }
  0x2e   :  { %p1033_p5 = scmp.ne.s32.totalorder %s27_s20, %s1032_s5  ;;  %p1038_p7 = scmp.lt.s32.totalorder %s1032_s5, %s1032_s5 }
  0x30   :  { %p1039_p8 = por %p1038_p7, %p1037_p6 }
  0x32   :  { %p1040_p9 = pnand %p1039_p8, %p1033_p5 }
  0x34   :  { %1043 = shalt.err (!%p1040_p9)
}
  0x35   :  { %32 = dma.hbm_to_vmem [thread:$0]  %s1341_s0, 256, %s27_s20, [#allocation3], %s1144_s25, %s1144_s25, %s1145_s26  }
  0x36   :  { %s1044_s17 = scalar_lea.hbm %s1344_s3, 2048 }
  0x37   :  { %p1045_p10 = scmp.ne.s32.totalorder %s1344_s3, %s1044_s17  ;;  %p1048_p11 = scmp.lt.u32.totalorder %s1044_s17, %s1344_s3 }
  0x39   :  { %p1050_p12 = pnand %p1048_p11, %p1045_p10 }
  0x3b   :  { %1053 = shalt.err (!%p1050_p12)
}
  0x3c   :  { %s1054_s21 = scalar_lea.vmem %s1243_s22, 2048  ;;  %p1059_p0 = scmp.lt.s32.totalorder %s1243_s22, %s1243_s22 }
  0x3d   :  { %p1055_p13 = scmp.ne.s32.totalorder %s1243_s22, %s1054_s21  ;;  %p1060_p1 = scmp.lt.s32.totalorder %s1054_s21, %s1054_s21 }
  0x3f   :  { %p1061_p2 = por %p1060_p1, %p1059_p0 }
  0x41   :  { %p1062_p3 = pnand %p1061_p2, %p1055_p13 }
  0x43   :  { %1065 = shalt.err (!%p1062_p3)
}
  0x44   :  { %58 = dma.hbm_to_vmem [thread:$0]  %s1344_s3, 2048, %s1243_s22, [#allocation6], %s1144_s25, %s1144_s25, %s1145_s26  }
  0x45   :  { %s1148_s23 = smov [#allocation10]   ;;  %s1066_s29 = scalar_lea.hbm %s1348_s7, 2048 }
  0x46   :  { %s80_s24 = sshll.u32 %s1148_s23, 4  ;;  %p1067_p4 = scmp.ne.s32.totalorder %s1348_s7, %s1066_s29  ;;  %s81_s24 = int_to_ptr.vmem [resolvable:$true] %s80_s24 }
  0x47   :  { %p1070_p5 = scmp.lt.u32.totalorder %s1066_s29, %s1348_s7 }
  0x49   :  { %p1072_p6 = pnand %p1070_p5, %p1067_p4 }
  0x4b   :  { %1075 = shalt.err (!%p1072_p6)
}
  0x4c   :  { %s1076_s12 = scalar_lea.vmem %s81_s24, 2048  ;;  %p1081_p8 = scmp.lt.s32.totalorder %s81_s24, %s81_s24 }
  0x4d   :  { %p1077_p7 = scmp.ne.s32.totalorder %s81_s24, %s1076_s12  ;;  %p1082_p9 = scmp.lt.s32.totalorder %s1076_s12, %s1076_s12 }
  0x4f   :  { %p1083_p10 = por %p1082_p9, %p1081_p8 }
  0x51   :  { %p1084_p11 = pnand %p1083_p10, %p1077_p7 }
  0x53   :  { %1087 = shalt.err (!%p1084_p11)
}
  0x54   :  { %86 = dma.hbm_to_vmem [thread:$0]  %s1348_s7, 2048, %s81_s24, [#allocation9], %s1144_s25, %s1144_s25, %s1145_s26  }
  0x55   :  { %1132 = dma.done.wait [#allocation3], 256  }
  0x56   :  { %1133 = vsyncadd [#allocation3], 4294967040 }
  0x57   :  { %1134 = dma.done.wait [#allocation6], 4096  }
  0x58   :  { %1135 = vsyncadd [#allocation6], 4294963200 }
  0x59   :  { %1136 = dma.done.wait [#allocation9], 4096  }
  0x5a   :  { %1137 = vsyncadd [#allocation9], 4294963200  ;;  %v106_v0 = vld [vmem:[#allocation5] sm:$0xff]  ;;  %v107_v1 = vld [vmem:[#allocation5 + $0x8] sm:$0xff]  ;;  %s1149_s18 = smov [#allocation11]  }
  0x5b   :  { %v108_v2 = vld [vmem:[#allocation5 + $0x10] sm:$0xff]  ;;  %v825_v3 = vpack.c.bf16 %v107_v1, %v106_v0  ;;  %v109_v4 = vld [vmem:[#allocation5 + $0x18] sm:$0xff]  ;;  %v110_v6 = vld [vmem:[#allocation5 + $0x20] sm:$0xff]  ;;  %s579_s1 = sshll.u32 %s1149_s18, 4  ;;  %s580_s1 = int_to_ptr.vmem [resolvable:$true] %s579_s1 }
  0x5c   :  { %v829_v5 = vpack.c.bf16 %v109_v4, %v108_v2  ;;  %v111_v7 = vld [vmem:[#allocation5 + $0x28] sm:$0xff]  ;;  %v112_v9 = vld [vmem:[#allocation5 + $0x30] sm:$0xff]  ;;  %v113_v10 = vld [vmem:[#allocation5 + $0x38] sm:$0xff]  ;;  %s1088_s14 = scalar_lea.vmem %s580_s1, 256  ;;  %p1093_p13 = scmp.lt.s32.totalorder %s580_s1, %s580_s1 }
  0x5d   :  { %826 = vmatprep.subr.bf16.mxu0 %v825_v3  ;;  %v833_v8 = vpack.c.bf16 %v111_v7, %v110_v6  ;;  %v104_v11 = vld [vmem:[#allocation2] sm:$0xff]  ;;  %v206_v12 = vld [vmem:[#allocation7] sm:$0xff]  ;;  %v207_v13 = vld [vmem:[#allocation7 + $0x8] sm:$0xff]  ;;  %v837_v20 = vpack.c.bf16 %v113_v10, %v112_v9  ;;  %p1089_p12 = scmp.ne.s32.totalorder %s580_s1, %s1088_s14  ;;  %p1094_p0 = scmp.lt.s32.totalorder %s1088_s14, %s1088_s14 }
  0x5e   :  { %828 = vmatpush3.bf16.msra.mxu0 %v825_v3  ;;  %717 = vmatprep.mubr.f32.mxu0 %v104_v11  ;;  %v208_v14 = vld [vmem:[#allocation7 + $0x10] sm:$0xff]  ;;  %v857_v15 = vpack.c.bf16 %v207_v13, %v206_v12  ;;  %v209_v16 = vld [vmem:[#allocation7 + $0x18] sm:$0xff]  ;;  %v210_v18 = vld [vmem:[#allocation7 + $0x20] sm:$0xff] }
  0x5f   :  { %830 = vmatprep.subr.bf16.mxu0 %v829_v5  ;;  %v861_v17 = vpack.c.bf16 %v209_v16, %v208_v14  ;;  %v211_v19 = vld [vmem:[#allocation7 + $0x28] sm:$0xff]  ;;  %v114_v21 = vld [vmem:[#allocation5 + $0x40] sm:$0xff]  ;;  %v212_v24 = vld [vmem:[#allocation7 + $0x30] sm:$0xff]  ;;  %p1095_p1 = por %p1094_p0, %p1093_p13 }
  0x60   :  { %858 = vmatprep.subr.bf16.mxu1 %v857_v15  ;;  %v115_v22 = vld [vmem:[#allocation5 + $0x48] sm:$0xff]  ;;  %v865_v23 = vpack.c.bf16 %v211_v19, %v210_v18  ;;  %v213_v25 = vld [vmem:[#allocation7 + $0x38] sm:$0xff]  ;;  %v116_v27 = vld [vmem:[#allocation5 + $0x50] sm:$0xff] }
  0x61   :  { %860 = vmatpush3.bf16.msra.mxu1 %v857_v15  ;;  %v841_v26 = vpack.c.bf16 %v115_v22, %v114_v21  ;;  %v117_v28 = vld [vmem:[#allocation5 + $0x58] sm:$0xff]  ;;  %v869_v29 = vpack.c.bf16 %v213_v25, %v212_v24  ;;  %v214_v30 = vld [vmem:[#allocation7 + $0x40] sm:$0xff]  ;;  %v215_v31 = vld [vmem:[#allocation7 + $0x48] sm:$0xff]  ;;  %p1096_p2 = pnand %p1095_p1, %p1089_p12 }
  0x62   :  { %832 = vmatpush3.bf16.msra.mxu0 %v829_v5  ;;  %862 = vmatprep.subr.bf16.mxu1 %v861_v17  ;;  %v845_v32 = vpack.c.bf16 %v117_v28, %v116_v27  ;;  %v118_v33 = vld [vmem:[#allocation5 + $0x60] sm:$0xff]  ;;  %v119_v34 = vld [vmem:[#allocation5 + $0x68] sm:$0xff]  ;;  %v873_v35 = vpack.c.bf16 %v215_v31, %v214_v30  ;;  %v216_v36 = vld [vmem:[#allocation7 + $0x50] sm:$0xff] }
  0x63   :  { %834 = vmatprep.subr.bf16.mxu0 %v833_v8  ;;  %v217_v37 = vld [vmem:[#allocation7 + $0x58] sm:$0xff]  ;;  %v849_v38 = vpack.c.bf16 %v119_v34, %v118_v33  ;;  %v120_v39 = vld [vmem:[#allocation5 + $0x70] sm:$0xff]  ;;  %v218_v42 = vld [vmem:[#allocation7 + $0x60] sm:$0xff] }
  0x64   :  { %v121_v40 = vld [vmem:[#allocation5 + $0x78] sm:$0xff]  ;;  %v877_v41 = vpack.c.bf16 %v217_v37, %v216_v36  ;;  %v219_v43 = vld [vmem:[#allocation7 + $0x68] sm:$0xff]  ;;  %v220_v47 = vld [vmem:[#allocation7 + $0x70] sm:$0xff] }
  0x65   :  { %864 = vmatpush3.bf16.msra.mxu1 %v861_v17  ;;  %v853_v44 = vpack.c.bf16 %v121_v40, %v120_v39  ;;  %v881_v45 = vpack.c.bf16 %v219_v43, %v218_v42  ;;  %v105_v46 = vld [vmem:[#allocation2 + $0x8] sm:$0xff]  ;;  %v341_v50 = vld [vmem:[#allocation8] sm:$0xff]  ;;  %v342_v51 = vld [vmem:[#allocation8 + $0x8] sm:$0xff] }
  0x66   :  { %836 = vmatpush3.bf16.msra.mxu0 %v833_v8  ;;  %866 = vmatprep.subr.bf16.mxu1 %v865_v23  ;;  %v221_v48 = vld [vmem:[#allocation7 + $0x78] sm:$0xff]  ;;  %v343_v52 = vld [vmem:[#allocation8 + $0x10] sm:$0xff]  ;;  %v889_v53 = vpack.c.bf16 %v342_v51, %v341_v50  ;;  %v345_v56 = vld [vmem:[#allocation8 + $0x20] sm:$0xff] }
  0x67   :  { %838 = vmatprep.subr.bf16.mxu0 %v837_v20  ;;  %v885_v49 = vpack.c.bf16 %v221_v48, %v220_v47  ;;  %v344_v54 = vld [vmem:[#allocation8 + $0x18] sm:$0xff]  ;;  %v346_v57 = vld [vmem:[#allocation8 + $0x28] sm:$0xff]  ;;  %v347_v59 = vld [vmem:[#allocation8 + $0x30] sm:$0xff] }
  0x68   :  { %v893_v55 = vpack.c.bf16 %v344_v54, %v343_v52  ;;  %v897_v58 = vpack.c.bf16 %v346_v57, %v345_v56  ;;  %v348_v60 = vld [vmem:[#allocation8 + $0x38] sm:$0xff]  ;;  %v349_v62 = vld [vmem:[#allocation8 + $0x40] sm:$0xff]  ;;  %v350_v63 = vld [vmem:[#allocation8 + $0x48] sm:$0xff] }
  0x69   :  { %868 = vmatpush3.bf16.msra.mxu1 %v865_v23  ;;  %v901_v61 = vpack.c.bf16 %v348_v60, %v347_v59  ;;  %v905_v0 = vpack.c.bf16 %v350_v63, %v349_v62  ;;  %v351_v1 = vld [vmem:[#allocation8 + $0x50] sm:$0xff]  ;;  %v352_v2 = vld [vmem:[#allocation8 + $0x58] sm:$0xff]  ;;  %v353_v4 = vld [vmem:[#allocation8 + $0x60] sm:$0xff] }
  0x6a   :  { %840 = vmatpush3.bf16.msra.mxu0 %v837_v20  ;;  %870 = vmatprep.subr.bf16.mxu1 %v869_v29  ;;  %v909_v3 = vpack.c.bf16 %v352_v2, %v351_v1  ;;  %v354_v5 = vld [vmem:[#allocation8 + $0x68] sm:$0xff]  ;;  %v609_v7 = vld [vmem:[%s1343_s2] ss:$0 sm:$0xff]  ;;  %v356_v15 = vld [vmem:[#allocation8 + $0x78] sm:$0xff] }
  0x6b   :  { %842 = vmatprep.subr.bf16.mxu0 %v841_v26  ;;  %v913_v6 = vpack.c.bf16 %v354_v5, %v353_v4  ;;  %v355_v14 = vld [vmem:[#allocation8 + $0x70] sm:$0xff]  ;;  %v441_v17 = vld [vmem:[#allocation10] sm:$0xff]  ;;  %v442_v18 = vld [vmem:[#allocation10 + $0x8] sm:$0xff] }
  0x6c   :  { %v917_v16 = vpack.c.bf16 %v356_v15, %v355_v14  ;;  %v443_v19 = vld [vmem:[#allocation10 + $0x10] sm:$0xff]  ;;  %v921_v20 = vpack.c.bf16 %v442_v18, %v441_v17  ;;  %v444_v21 = vld [vmem:[#allocation10 + $0x18] sm:$0xff]  ;;  %v445_v23 = vld [vmem:[#allocation10 + $0x20] sm:$0xff] }
  0x6d   :  { %872 = vmatpush3.bf16.msra.mxu1 %v869_v29  ;;  %v925_v22 = vpack.c.bf16 %v444_v21, %v443_v19  ;;  %v446_v24 = vld [vmem:[#allocation10 + $0x28] sm:$0xff]  ;;  %v448_v27 = vld [vmem:[#allocation10 + $0x38] sm:$0xff]  ;;  %v449_v29 = vld [vmem:[#allocation10 + $0x40] sm:$0xff] }
  0x6e   :  { %844 = vmatpush3.bf16.msra.mxu0 %v841_v26  ;;  %874 = vmatprep.subr.bf16.mxu1 %v873_v35  ;;  %v929_v25 = vpack.c.bf16 %v446_v24, %v445_v23  ;;  %v447_v26 = vld [vmem:[#allocation10 + $0x30] sm:$0xff]  ;;  %v450_v30 = vld [vmem:[#allocation10 + $0x48] sm:$0xff]  ;;  %v452_v33 = vld [vmem:[#allocation10 + $0x58] sm:$0xff] }
  0x6f   :  { %846 = vmatprep.subr.bf16.mxu0 %v845_v32  ;;  %v933_v28 = vpack.c.bf16 %v448_v27, %v447_v26  ;;  %v937_v31 = vpack.c.bf16 %v450_v30, %v449_v29  ;;  %v454_v36 = vld [vmem:[#allocation10 + $0x68] sm:$0xff]  ;;  %v611_v14 = vld [vmem:[%s1347_s6] ss:$0 sm:$0xff] }
  0x71   :  { %876 = vmatpush3.bf16.msra.mxu1 %v873_v35  ;;  %v453_v35 = vld [vmem:[#allocation10 + $0x60] sm:$0xff] }
  0x72   :  { %848 = vmatpush3.bf16.msra.mxu0 %v845_v32  ;;  %878 = vmatprep.subr.bf16.mxu1 %v877_v41  ;;  %v451_v32 = vld [vmem:[#allocation10 + $0x50] sm:$0xff]  ;;  %v945_v37 = vpack.c.bf16 %v454_v36, %v453_v35 }
  0x73   :  { %850 = vmatprep.subr.bf16.mxu0 %v849_v38  ;;  %v941_v34 = vpack.c.bf16 %v452_v33, %v451_v32 }
  0x75   :  { %880 = vmatpush3.bf16.msra.mxu1 %v877_v41 }
  0x76   :  { %852 = vmatpush3.bf16.msra.mxu0 %v849_v38  ;;  %882 = vmatprep.subr.bf16.mxu1 %v881_v45  ;;  %v610_v38 = vld [vmem:[%s1345_s4] ss:$0 sm:$0xff] }
  0x77   :  { %854 = vmatprep.subr.bf16.mxu0 %v853_v44 }
  0x79   :  { %884 = vmatpush3.bf16.msra.mxu1 %v881_v45 }
  0x7a   :  { %856 = vmatpush3.bf16.msra.mxu0 %v853_v44  ;;  %886 = vmatprep.subr.bf16.mxu1 %v885_v49 }
  0x7b   :  { %890 = vmatprep.subr.bf16.mxu0 %v889_v53 }
  0x7d   :  { %718 = vmatmul.mubr.f32.vlgmr.msra.gmra.mrb[0].mxu0 %v105_v46  ;;  %888 = vmatpush3.bf16.msra.mxu1 %v885_v49 }
  0x7e   :  { %892 = vmatpush3.bf16.msra.mxu0 %v889_v53  ;;  %922 = vmatprep.subr.bf16.mxu1 %v921_v20 }
  0x7f   :  { %894 = vmatprep.subr.bf16.mxu0 %v893_v55 }
  0x82   :  { %896 = vmatpush3.bf16.msra.mxu0 %v893_v55  ;;  %v304_v55 = vlaneseq }
  0x83   :  { %898 = vmatprep.subr.bf16.mxu0 %v897_v58 }
  0x84   :  { %v1301_v59 = vand.u32 127, %v304_v55 }
  0x86   :  { %900 = vmatpush3.bf16.msra.mxu0 %v897_v58  ;;  %vm306_vm1 = vcmp.ge.s32.totalorder %v1301_v59, 8 }
  0x87   :  { %902 = vmatprep.subr.bf16.mxu0 %v901_v61 }
  0x8a   :  { %904 = vmatpush3.bf16.msra.mxu0 %v901_v61 }
  0x8b   :  { %906 = vmatprep.subr.bf16.mxu0 %v905_v0 }
  0x8e   :  { %908 = vmatpush3.bf16.msra.mxu0 %v905_v0 }
  0x8f   :  { %910 = vmatprep.subr.bf16.mxu0 %v909_v3 }
  0x92   :  { %912 = vmatpush3.bf16.msra.mxu0 %v909_v3 }
  0x93   :  { %914 = vmatprep.subr.bf16.mxu0 %v913_v6 }
  0x96   :  { %916 = vmatpush3.bf16.msra.mxu0 %v913_v6 }
  0x97   :  { %918 = vmatprep.subr.bf16.mxu0 %v917_v16 }
  0x9a   :  { %920 = vmatpush3.bf16.msra.mxu0 %v917_v16 }
 0x150   :  { %v719_v8 = vpop.f32.mrb[0].mxu0 }
 0x151   :  { %v201_v9 = vadd.f32 %v719_v8, %v609_v7  ;;  %v195_v10 = vpop.f32.mrb[1].mxu0 }
 0x152   :  { %v196_v11 = vadd.f32 %v609_v7, %v195_v10 }
 0x153   :  { %v205_v13 = vmax.f32 %v201_v9, 0.0 }
 0x154   :  { %v204_v12 = vmax.f32 %v196_v11, 0.0  ;;  %v455_v11 = vld [vmem:[#allocation10 + $0x70] sm:$0xff] }
 0x156   :  { %752 = vmatprep.mubr.f32.mxu1 %v204_v12  ;;  %v456_v12 = vld [vmem:[#allocation10 + $0x78] sm:$0xff] }
 0x157   :  { %753 = vmatmul.mubr.f32.vlgmr.msra.gmra.mrb[0].mxu1 %v205_v13  ;;  %v949_v13 = vpack.c.bf16 %v456_v12, %v455_v11 }
 0x158   :  { %924 = vmatpush3.bf16.msra.mxu1 %v921_v20 }
 0x159   :  { %926 = vmatprep.subr.bf16.mxu1 %v925_v22 }
 0x15c   :  { %928 = vmatpush3.bf16.msra.mxu1 %v925_v22 }
 0x15d   :  { %930 = vmatprep.subr.bf16.mxu1 %v929_v25 }
 0x160   :  { %932 = vmatpush3.bf16.msra.mxu1 %v929_v25 }
 0x161   :  { %934 = vmatprep.subr.bf16.mxu1 %v933_v28 }
 0x164   :  { %936 = vmatpush3.bf16.msra.mxu1 %v933_v28 }
 0x165   :  { %938 = vmatprep.subr.bf16.mxu1 %v937_v31 }
 0x168   :  { %940 = vmatpush3.bf16.msra.mxu1 %v937_v31 }
 0x169   :  { %942 = vmatprep.subr.bf16.mxu1 %v941_v34 }
 0x16c   :  { %944 = vmatpush3.bf16.msra.mxu1 %v941_v34 }
 0x16d   :  { %946 = vmatprep.subr.bf16.mxu1 %v945_v37 }
 0x170   :  { %948 = vmatpush3.bf16.msra.mxu1 %v945_v37 }
 0x171   :  { %950 = vmatprep.subr.bf16.mxu1 %v949_v13 }
 0x174   :  { %952 = vmatpush3.bf16.msra.mxu1 %v949_v13 }
 0x22a   :  { %v754_v39 = vpop.f32.mrb[0].mxu1 }
 0x22b   :  { %v301_v40 = vadd.f32 %v754_v39, %v610_v38  ;;  %v295_v41 = vpop.f32.mrb[1].mxu1 }
 0x22c   :  { %v296_v42 = vadd.f32 %v610_v38, %v295_v41 }
 0x22d   :  { %v310_v43 = vand.u32 2147483647, %v301_v40  ;;  %v308_v1 = vmax.f32 %v301_v40, 0.0 }
 0x22e   :  { %v309_v44 = vand.u32 2147483647, %v296_v42  ;;  %787 = vmatprep.mubr.f32.mxu0 %v296_v42  ;;  %v307_v4 = vmax.f32 %v296_v42, 0.0 }
 0x22f   :  { %v312_v45 = vsub.f32 0.0, %v310_v43  ;;  %788 = vmatmul.mubr.f32.vlgmr.msra.gmra.mrb[2].mxu0 %v301_v40 }
 0x230   :  { %v311_v46 = vsub.f32 0.0, %v309_v44 }
 0x231   :  { %v315_v47 = vmul.f32 1.442695, %v312_v45 }
 0x232   :  { %v313_v48 = vmul.f32 1.442695, %v311_v46 }
 0x233   :  { %962 = vpow2.f32 %v315_v47 }
 0x234   :  { %964 = vpow2.f32 %v313_v48 }
 0x23d   :  { %v963_v49 = vpop.eup %962 }
 0x23e   :  { %v965_v50 = vpop.eup %964  ;;  %v326_v51 = vadd.f32 1.0, %v963_v49  ;;  %v329_v53 = vmul.f32 -0.5, %v963_v49  ;;  %v332_v58 = vand.u32 2147483647, %v963_v49 }
 0x23f   :  { %v317_v52 = vadd.f32 1.0, %v965_v50  ;;  %v320_v54 = vmul.f32 -0.5, %v965_v50  ;;  %v323_v60 = vand.u32 2147483647, %v965_v50 }
 0x240   :  { %966 = vlog2.f32 %v326_v51  ;;  %v330_v56 = vadd.f32 1.0, %v329_v53  ;;  %vm333_vm0 = vcmp.lt.f32.partialorder %v332_v58, 0.0004427343 }
 0x241   :  { %968 = vlog2.f32 %v317_v52  ;;  %v321_v57 = vadd.f32 1.0, %v320_v54  ;;  %vm324_vm2 = vcmp.lt.f32.partialorder %v323_v60, 0.0004427343 }
 0x242   :  { %v331_v0 = vmul.f32 %v963_v49, %v330_v56 }
 0x243   :  { %v322_v3 = vmul.f32 %v965_v50, %v321_v57 }
 0x24a   :  { %v967_v61 = vpop.eup %966 }
 0x24b   :  { %v969_v62 = vpop.eup %968  ;;  %v328_v63 = vmul.f32 0.6931472, %v967_v61 }
 0x24c   :  { %v319_v2 = vmul.f32 0.6931472, %v969_v62 }
 0x24d   :  { %v334_v5 = vsel %vm333_vm0, %v331_v0, %v328_v63 }
 0x24e   :  { %v325_v6 = vsel %vm324_vm2, %v322_v3, %v319_v2  ;;  %v336_v7 = vadd.f32 %v334_v5, %v308_v1 }
 0x24f   :  { %v335_v8 = vadd.f32 %v325_v6, %v307_v4 }
 0x250   :  { %v338_v9 = vsel %vm306_vm1, %v336_v7, %v301_v40 }
 0x251   :  { %v337_v10 = vsel %vm306_vm1, %v335_v8, %v296_v42  ;;  %340 = vst [vmem:[#allocation11 + $0x8] sm:$0xff] %v338_v9 }
 0x252   :  { %339 = vst [vmem:[#allocation11] sm:$0xff] %v337_v10 }
 0x302   :  { %v789_v15 = vpop.f32.mrb[2].mxu0 }
 0x303   :  { %v436_v16 = vadd.f32 %v789_v15, %v611_v14  ;;  %v430_v17 = vpop.f32.mrb[3].mxu0 }
 0x304   :  { %v431_v18 = vadd.f32 %v611_v14, %v430_v17 }
 0x305   :  { %v440_v20 = vmax.f32 %v436_v16, 0.0 }
 0x306   :  { %v439_v19 = vmax.f32 %v431_v18, 0.0 }
 0x308   :  { %822 = vmatprep.mubr.f32.mxu1 %v439_v19 }
 0x309   :  { %823 = vmatmul.mubr.f32.vlgmr.msra.gmra.mrb[2].mxu1 %v440_v20 }
 0x30a   :  { %1099 = shalt.err (!%p1096_p2)
}
 0x30b   :  { %s1100_s21 = scalar_lea.hbm %s1350_s9, 256 }
 0x30c   :  { %p1101_p3 = scmp.ne.s32.totalorder %s1350_s9, %s1100_s21  ;;  %p1104_p4 = scmp.lt.u32.totalorder %s1100_s21, %s1350_s9 }
 0x30e   :  { %p1106_p5 = pnand %p1104_p4, %p1101_p3 }
 0x310   :  { %1109 = shalt.err (!%p1106_p5)
}
 0x311   :  { %585 = dma.vmem_to_hbm [thread:$0]  %s580_s1, 256, %s1350_s9, [#allocation4], %s1144_s25, %s1144_s25, %s1145_s26   ;;  %vm539_vm5 = vcmp.ge.s32.totalorder %v1301_v59, 32 }
 0x312   :  { %v612_v21 = vld [vmem:[%s1349_s8] ss:$0 sm:$0xff]  ;;  %s1150_s8 = smov [#allocation12]  }
 0x313   :  { %s591_s9 = sshll.u32 %s1150_s8, 4  ;;  %s592_s9 = int_to_ptr.vmem [resolvable:$true] %s591_s9 }
 0x314   :  { %s1110_s11 = scalar_lea.vmem %s592_s9, 256  ;;  %p1115_p7 = scmp.lt.s32.totalorder %s592_s9, %s592_s9 }
 0x315   :  { %p1111_p6 = scmp.ne.s32.totalorder %s592_s9, %s1110_s11  ;;  %p1116_p8 = scmp.lt.s32.totalorder %s1110_s11, %s1110_s11 }
 0x317   :  { %p1117_p9 = por %p1116_p8, %p1115_p7 }
 0x319   :  { %p1118_p10 = pnand %p1117_p9, %p1111_p6 }
 0x3dc   :  { %v824_v22 = vpop.f32.mrb[2].mxu1 }
 0x3dd   :  { %v536_v23 = vadd.f32 %v824_v22, %v612_v21  ;;  %v530_v24 = vpop.f32.mrb[3].mxu1 }
 0x3de   :  { %v531_v25 = vadd.f32 %v612_v21, %v530_v24 }
 0x3df   :  { %v543_v26 = vand.u32 2147483647, %v536_v23  ;;  %v541_v46 = vmax.f32 %v536_v23, 0.0 }
 0x3e0   :  { %v542_v27 = vand.u32 2147483647, %v531_v25  ;;  %v540_v50 = vmax.f32 %v531_v25, 0.0 }
 0x3e1   :  { %v545_v28 = vsub.f32 0.0, %v543_v26 }
 0x3e2   :  { %v544_v29 = vsub.f32 0.0, %v542_v27 }
 0x3e3   :  { %v548_v30 = vmul.f32 1.442695, %v545_v28 }
 0x3e4   :  { %v546_v31 = vmul.f32 1.442695, %v544_v29 }
 0x3e5   :  { %970 = vpow2.f32 %v548_v30 }
 0x3e6   :  { %972 = vpow2.f32 %v546_v31 }
 0x3ef   :  { %v971_v32 = vpop.eup %970 }
 0x3f0   :  { %v973_v33 = vpop.eup %972  ;;  %v559_v34 = vadd.f32 1.0, %v971_v32  ;;  %v562_v36 = vmul.f32 -0.5, %v971_v32  ;;  %v565_v39 = vand.u32 2147483647, %v971_v32 }
 0x3f1   :  { %v550_v35 = vadd.f32 1.0, %v973_v33  ;;  %v553_v37 = vmul.f32 -0.5, %v973_v33  ;;  %v556_v41 = vand.u32 2147483647, %v973_v33 }
 0x3f2   :  { %974 = vlog2.f32 %v559_v34  ;;  %v563_v38 = vadd.f32 1.0, %v562_v36  ;;  %vm566_vm3 = vcmp.lt.f32.partialorder %v565_v39, 0.0004427343 }
 0x3f3   :  { %976 = vlog2.f32 %v550_v35  ;;  %v554_v40 = vadd.f32 1.0, %v553_v37  ;;  %vm557_vm4 = vcmp.lt.f32.partialorder %v556_v41, 0.0004427343 }
 0x3f4   :  { %v564_v45 = vmul.f32 %v971_v32, %v563_v38 }
 0x3f5   :  { %v555_v48 = vmul.f32 %v973_v33, %v554_v40 }
 0x3fc   :  { %v975_v42 = vpop.eup %974 }
 0x3fd   :  { %v977_v43 = vpop.eup %976  ;;  %v561_v44 = vmul.f32 0.6931472, %v975_v42 }
 0x3fe   :  { %v552_v47 = vmul.f32 0.6931472, %v977_v43 }
 0x3ff   :  { %v567_v49 = vsel %vm566_vm3, %v564_v45, %v561_v44 }
 0x400   :  { %v569_v51 = vadd.f32 %v567_v49, %v541_v46  ;;  %v558_v52 = vsel %vm557_vm4, %v555_v48, %v552_v47 }
 0x401   :  { %v568_v53 = vadd.f32 %v558_v52, %v540_v50 }
 0x402   :  { %v571_v54 = vsel %vm539_vm5, %v569_v51, %v536_v23 }
 0x403   :  { %v570_v55 = vsel %vm539_vm5, %v568_v53, %v531_v25  ;;  %573 = vst [vmem:[#allocation12 + $0x8] sm:$0xff] %v571_v54 }
 0x404   :  { %572 = vst [vmem:[#allocation12] sm:$0xff] %v570_v55 }
 0x405   :  { %1121 = shalt.err (!%p1118_p10)
}
 0x406   :  { %s1122_s12 = scalar_lea.hbm %s1351_s10, 256 }
 0x407   :  { %p1123_p11 = scmp.ne.s32.totalorder %s1351_s10, %s1122_s12  ;;  %p1126_p12 = scmp.lt.u32.totalorder %s1122_s12, %s1351_s10 }
 0x409   :  { %p1128_p13 = pnand %p1126_p12, %p1123_p11 }
 0x40b   :  { %1131 = shalt.err (!%p1128_p13)
}
 0x40c   :  { %597 = dma.vmem_to_hbm [thread:$0]  %s592_s9, 256, %s1351_s10, [#allocation13], %s1144_s25, %s1144_s25, %s1145_s26  }
 0x40d   :  { %1138 = dma.done.wait [#allocation4], 256  }
 0x40e   :  { %1139 = vsyncadd [#allocation4], 4294967040 }
 0x40f   :  { %1140 = dma.done.wait [#allocation13], 256  }
 0x410   :  { %1141 = vsyncadd [#allocation13], 4294967040 }
 0x411   :  { %604 = vsyncpa [#allocation3], 1 }
 0x412   :  { %605 = vsyncpa [#allocation6], 1 }
 0x413   :  { %606 = vsyncpa [#allocation9], 1 }
 0x414   :  { %607 = vsyncpa [#allocation4], 1 }
 0x415   :  { %608 = vsyncpa [#allocation13], 1 }

// kernel: tpu_custom_call.1
= control target key start
LH: loop header
LB: loop body
LE: loop exit
PB: predicated region body
PF: predicated region fallthrough
CT: control target
= control target key end

     0   :  { %16 = vsyncpa [#allocation3], 0  ;;  %s1341_s0 = inlined_call_operand.hbm [shape: f32[16,128], index: 0, kind: input, shape index: {}]   ;;  %s1342_s1 = inlined_call_operand.hbm [shape: f32[128,128], index: 1, kind: input, shape index: {}]   ;;  %s1343_s2 = inlined_call_operand.vmem [shape: f32[1,128], index: 2, kind: input, shape index: {}]   ;;  %s1344_s3 = inlined_call_operand.hbm [shape: f32[128,128], index: 3, kind: input, shape index: {}]   ;;  %s1345_s4 = inlined_call_operand.vmem [shape: f32[1,128], index: 4, kind: input, shape index: {}]   ;;  %s1346_s5 = inlined_call_operand.hbm [shape: f32[128,128], index: 5, kind: input, shape index: {}]   ;;  %s1347_s6 = inlined_call_operand.vmem [shape: f32[1,128], index: 6, kind: input, shape index: {}]   ;;  %s1348_s7 = inlined_call_operand.hbm [shape: f32[128,128], index: 7, kind: input, shape index: {}]   ;;  %s1349_s8 = inlined_call_operand.vmem [shape: f32[1,128], index: 8, kind: input, shape index: {}]   ;;  %s1350_s9 = inlined_call_operand.hbm [shape: f32[16,128], index: 9, kind: output, shape index: {0}]   ;;  %s1351_s10 = inlined_call_operand.hbm [shape: f32[16,128], index: 10, kind: output, shape index: {1}]  }
   0x1   :  { %17 = vsyncpa [#allocation6], 0 }
   0x2   :  { %18 = vsyncpa [#allocation9], 0 }
   0x3   :  { %19 = vsyncpa [#allocation4], 0 }
   0x4   :  { %20 = vsyncpa [#allocation13], 0  ;;  %s1142_s13 = smov [#allocation5]   ;;  %s1143_s15 = smov [#allocation8]  }
   0x5   :  { %s38_s14 = sshll.u32 %s1142_s13, 4  ;;  %s66_s16 = sshll.u32 %s1143_s15, 4  ;;  %s39_s14 = int_to_ptr.vmem [resolvable:$true] %s38_s14  ;;  %s1206_s16 = int_to_ptr.vmem [resolvable:$true] %s66_s16 }
   0x6   :  { %s978_s19 = scalar_lea.hbm %s1342_s1, 2048 }
   0x7   :  { %p979_p0 = scmp.ne.s32.totalorder %s1342_s1, %s978_s19  ;;  %p982_p1 = scmp.lt.u32.totalorder %s978_s19, %s1342_s1 }
   0x9   :  { %p984_p2 = pnand %p982_p1, %p979_p0 }
   0xb   :  { %987 = shalt.err (!%p984_p2)
}
   0xc   :  { %s988_s24 = scalar_lea.vmem %s39_s14, 2048  ;;  %p993_p4 = scmp.lt.s32.totalorder %s39_s14, %s39_s14 }
   0xd   :  { %p989_p3 = scmp.ne.s32.totalorder %s39_s14, %s988_s24  ;;  %p994_p5 = scmp.lt.s32.totalorder %s988_s24, %s988_s24 }
   0xf   :  { %p995_p6 = por %p994_p5, %p993_p4 }
  0x11   :  { %p996_p7 = pnand %p995_p6, %p989_p3 }
  0x13   :  { %999 = shalt.err (!%p996_p7)
}
  0x14   :  { %s1144_s25 = smov 128   ;;  %s1145_s26 = smov 8  }
  0x15   :  { %44 = dma.hbm_to_vmem [thread:$0]  %s1342_s1, 2048, %s39_s14, [#allocation6], %s1144_s25, %s1144_s25, %s1145_s26  }
  0x16   :  { %s1000_s11 = scalar_lea.hbm %s1346_s5, 2048 }
  0x17   :  { %p1001_p8 = scmp.ne.s32.totalorder %s1346_s5, %s1000_s11  ;;  %p1004_p9 = scmp.lt.u32.totalorder %s1000_s11, %s1346_s5 }
  0x19   :  { %p1006_p10 = pnand %p1004_p9, %p1001_p8 }
  0x1b   :  { %1009 = shalt.err (!%p1006_p10)
}
  0x1c   :  { %s1010_s18 = scalar_lea.vmem %s1206_s16, 2048  ;;  %p1015_p12 = scmp.lt.s32.totalorder %s1206_s16, %s1206_s16 }
  0x1d   :  { %p1011_p11 = scmp.ne.s32.totalorder %s1206_s16, %s1010_s18  ;;  %p1016_p13 = scmp.lt.s32.totalorder %s1010_s18, %s1010_s18 }
  0x1f   :  { %p1017_p0 = por %p1016_p13, %p1015_p12 }
  0x21   :  { %p1018_p1 = pnand %p1017_p0, %p1011_p11 }
  0x23   :  { %1021 = shalt.err (!%p1018_p1)
}
  0x24   :  { %72 = dma.hbm_to_vmem [thread:$0]  %s1346_s5, 2048, %s1206_s16, [#allocation9], %s1144_s25, %s1144_s25, %s1145_s26  }
  0x25   :  { %s1146_s19 = smov [#allocation2]   ;;  %s1147_s21 = smov [#allocation7]  }
  0x26   :  { %s26_s20 = sshll.u32 %s1146_s19, 4  ;;  %s52_s22 = sshll.u32 %s1147_s21, 4  ;;  %s27_s20 = int_to_ptr.vmem [resolvable:$true] %s26_s20  ;;  %s1243_s22 = int_to_ptr.vmem [resolvable:$true] %s52_s22 }
  0x27   :  { %s1022_s27 = scalar_lea.hbm %s1341_s0, 256 }
  0x28   :  { %p1023_p2 = scmp.ne.s32.totalorder %s1341_s0, %s1022_s27  ;;  %p1026_p3 = scmp.lt.u32.totalorder %s1022_s27, %s1341_s0 }
  0x2a   :  { %p1028_p4 = pnand %p1026_p3, %p1023_p2 }
  0x2c   :  { %1031 = shalt.err (!%p1028_p4)
}
  0x2d   :  { %s1032_s5 = scalar_lea.vmem %s27_s20, 256  ;;  %p1037_p6 = scmp.lt.s32.totalorder %s27_s20, %s27_s20 }
  0x2e   :  { %p1033_p5 = scmp.ne.s32.totalorder %s27_s20, %s1032_s5  ;;  %p1038_p7 = scmp.lt.s32.totalorder %s1032_s5, %s1032_s5 }
  0x30   :  { %p1039_p8 = por %p1038_p7, %p1037_p6 }
  0x32   :  { %p1040_p9 = pnand %p1039_p8, %p1033_p5 }
  0x34   :  { %1043 = shalt.err (!%p1040_p9)
}
  0x35   :  { %32 = dma.hbm_to_vmem [thread:$0]  %s1341_s0, 256, %s27_s20, [#allocation3], %s1144_s25, %s1144_s25, %s1145_s26  }
  0x36   :  { %s1044_s17 = scalar_lea.hbm %s1344_s3, 2048 }
  0x37   :  { %p1045_p10 = scmp.ne.s32.totalorder %s1344_s3, %s1044_s17  ;;  %p1048_p11 = scmp.lt.u32.totalorder %s1044_s17, %s1344_s3 }
  0x39   :  { %p1050_p12 = pnand %p1048_p11, %p1045_p10 }
  0x3b   :  { %1053 = shalt.err (!%p1050_p12)
}
  0x3c   :  { %s1054_s21 = scalar_lea.vmem %s1243_s22, 2048  ;;  %p1059_p0 = scmp.lt.s32.totalorder %s1243_s22, %s1243_s22 }
  0x3d   :  { %p1055_p13 = scmp.ne.s32.totalorder %s1243_s22, %s1054_s21  ;;  %p1060_p1 = scmp.lt.s32.totalorder %s1054_s21, %s1054_s21 }
  0x3f   :  { %p1061_p2 = por %p1060_p1, %p1059_p0 }
  0x41   :  { %p1062_p3 = pnand %p1061_p2, %p1055_p13 }
  0x43   :  { %1065 = shalt.err (!%p1062_p3)
}
  0x44   :  { %58 = dma.hbm_to_vmem [thread:$0]  %s1344_s3, 2048, %s1243_s22, [#allocation6], %s1144_s25, %s1144_s25, %s1145_s26  }
  0x45   :  { %s1148_s23 = smov [#allocation10]   ;;  %s1066_s29 = scalar_lea.hbm %s1348_s7, 2048 }
  0x46   :  { %s80_s24 = sshll.u32 %s1148_s23, 4  ;;  %p1067_p4 = scmp.ne.s32.totalorder %s1348_s7, %s1066_s29  ;;  %s81_s24 = int_to_ptr.vmem [resolvable:$true] %s80_s24 }
  0x47   :  { %p1070_p5 = scmp.lt.u32.totalorder %s1066_s29, %s1348_s7 }
  0x49   :  { %p1072_p6 = pnand %p1070_p5, %p1067_p4 }
  0x4b   :  { %1075 = shalt.err (!%p1072_p6)
}
  0x4c   :  { %s1076_s12 = scalar_lea.vmem %s81_s24, 2048  ;;  %p1081_p8 = scmp.lt.s32.totalorder %s81_s24, %s81_s24 }
  0x4d   :  { %p1077_p7 = scmp.ne.s32.totalorder %s81_s24, %s1076_s12  ;;  %p1082_p9 = scmp.lt.s32.totalorder %s1076_s12, %s1076_s12 }
  0x4f   :  { %p1083_p10 = por %p1082_p9, %p1081_p8 }
  0x51   :  { %p1084_p11 = pnand %p1083_p10, %p1077_p7 }
  0x53   :  { %1087 = shalt.err (!%p1084_p11)
}
  0x54   :  { %86 = dma.hbm_to_vmem [thread:$0]  %s1348_s7, 2048, %s81_s24, [#allocation9], %s1144_s25, %s1144_s25, %s1145_s26  }
  0x55   :  { %1132 = dma.done.wait [#allocation3], 256  }
  0x56   :  { %1133 = vsyncadd [#allocation3], 4294967040 }
  0x57   :  { %1134 = dma.done.wait [#allocation6], 4096  }
  0x58   :  { %1135 = vsyncadd [#allocation6], 4294963200 }
  0x59   :  { %1136 = dma.done.wait [#allocation9], 4096  }
  0x5a   :  { %1137 = vsyncadd [#allocation9], 4294963200  ;;  %v106_v0 = vld [vmem:[#allocation5] sm:$0xff]  ;;  %v107_v1 = vld [vmem:[#allocation5 + $0x8] sm:$0xff]  ;;  %s1149_s18 = smov [#allocation11]  }
  0x5b   :  { %v108_v2 = vld [vmem:[#allocation5 + $0x10] sm:$0xff]  ;;  %v825_v3 = vpack.c.bf16 %v107_v1, %v106_v0  ;;  %v109_v4 = vld [vmem:[#allocation5 + $0x18] sm:$0xff]  ;;  %v110_v6 = vld [vmem:[#allocation5 + $0x20] sm:$0xff]  ;;  %s579_s1 = sshll.u32 %s1149_s18, 4  ;;  %s580_s1 = int_to_ptr.vmem [resolvable:$true] %s579_s1 }
  0x5c   :  { %v829_v5 = vpack.c.bf16 %v109_v4, %v108_v2  ;;  %v111_v7 = vld [vmem:[#allocation5 + $0x28] sm:$0xff]  ;;  %v112_v9 = vld [vmem:[#allocation5 + $0x30] sm:$0xff]  ;;  %v113_v10 = vld [vmem:[#allocation5 + $0x38] sm:$0xff]  ;;  %s1088_s14 = scalar_lea.vmem %s580_s1, 256  ;;  %p1093_p13 = scmp.lt.s32.totalorder %s580_s1, %s580_s1 }
  0x5d   :  { %826 = vmatprep.subr.bf16.mxu0 %v825_v3  ;;  %v833_v8 = vpack.c.bf16 %v111_v7, %v110_v6  ;;  %v104_v11 = vld [vmem:[#allocation2] sm:$0xff]  ;;  %v206_v12 = vld [vmem:[#allocation7] sm:$0xff]  ;;  %v207_v13 = vld [vmem:[#allocation7 + $0x8] sm:$0xff]  ;;  %v837_v20 = vpack.c.bf16 %v113_v10, %v112_v9  ;;  %p1089_p12 = scmp.ne.s32.totalorder %s580_s1, %s1088_s14  ;;  %p1094_p0 = scmp.lt.s32.totalorder %s1088_s14, %s1088_s14 }
  0x5e   :  { %828 = vmatpush3.bf16.msra.mxu0 %v825_v3  ;;  %717 = vmatprep.mubr.f32.mxu0 %v104_v11  ;;  %v208_v14 = vld [vmem:[#allocation7 + $0x10] sm:$0xff]  ;;  %v857_v15 = vpack.c.bf16 %v207_v13, %v206_v12  ;;  %v209_v16 = vld [vmem:[#allocation7 + $0x18] sm:$0xff]  ;;  %v210_v18 = vld [vmem:[#allocation7 + $0x20] sm:$0xff] }
  0x5f   :  { %830 = vmatprep.subr.bf16.mxu0 %v829_v5  ;;  %v861_v17 = vpack.c.bf16 %v209_v16, %v208_v14  ;;  %v211_v19 = vld [vmem:[#allocation7 + $0x28] sm:$0xff]  ;;  %v114_v21 = vld [vmem:[#allocation5 + $0x40] sm:$0xff]  ;;  %v212_v24 = vld [vmem:[#allocation7 + $0x30] sm:$0xff]  ;;  %p1095_p1 = por %p1094_p0, %p1093_p13 }
  0x60   :  { %858 = vmatprep.subr.bf16.mxu1 %v857_v15  ;;  %v115_v22 = vld [vmem:[#allocation5 + $0x48] sm:$0xff]  ;;  %v865_v23 = vpack.c.bf16 %v211_v19, %v210_v18  ;;  %v213_v25 = vld [vmem:[#allocation7 + $0x38] sm:$0xff]  ;;  %v116_v27 = vld [vmem:[#allocation5 + $0x50] sm:$0xff] }
  0x61   :  { %860 = vmatpush3.bf16.msra.mxu1 %v857_v15  ;;  %v841_v26 = vpack.c.bf16 %v115_v22, %v114_v21  ;;  %v117_v28 = vld [vmem:[#allocation5 + $0x58] sm:$0xff]  ;;  %v869_v29 = vpack.c.bf16 %v213_v25, %v212_v24  ;;  %v214_v30 = vld [vmem:[#allocation7 + $0x40] sm:$0xff]  ;;  %v215_v31 = vld [vmem:[#allocation7 + $0x48] sm:$0xff]  ;;  %p1096_p2 = pnand %p1095_p1, %p1089_p12 }
  0x62   :  { %832 = vmatpush3.bf16.msra.mxu0 %v829_v5  ;;  %862 = vmatprep.subr.bf16.mxu1 %v861_v17  ;;  %v845_v32 = vpack.c.bf16 %v117_v28, %v116_v27  ;;  %v118_v33 = vld [vmem:[#allocation5 + $0x60] sm:$0xff]  ;;  %v119_v34 = vld [vmem:[#allocation5 + $0x68] sm:$0xff]  ;;  %v873_v35 = vpack.c.bf16 %v215_v31, %v214_v30  ;;  %v216_v36 = vld [vmem:[#allocation7 + $0x50] sm:$0xff] }
  0x63   :  { %834 = vmatprep.subr.bf16.mxu0 %v833_v8  ;;  %v217_v37 = vld [vmem:[#allocation7 + $0x58] sm:$0xff]  ;;  %v849_v38 = vpack.c.bf16 %v119_v34, %v118_v33  ;;  %v120_v39 = vld [vmem:[#allocation5 + $0x70] sm:$0xff]  ;;  %v218_v42 = vld [vmem:[#allocation7 + $0x60] sm:$0xff] }
  0x64   :  { %v121_v40 = vld [vmem:[#allocation5 + $0x78] sm:$0xff]  ;;  %v877_v41 = vpack.c.bf16 %v217_v37, %v216_v36  ;;  %v219_v43 = vld [vmem:[#allocation7 + $0x68] sm:$0xff]  ;;  %v220_v47 = vld [vmem:[#allocation7 + $0x70] sm:$0xff] }
  0x65   :  { %864 = vmatpush3.bf16.msra.mxu1 %v861_v17  ;;  %v853_v44 = vpack.c.bf16 %v121_v40, %v120_v39  ;;  %v881_v45 = vpack.c.bf16 %v219_v43, %v218_v42  ;;  %v105_v46 = vld [vmem:[#allocation2 + $0x8] sm:$0xff]  ;;  %v341_v50 = vld [vmem:[#allocation8] sm:$0xff]  ;;  %v342_v51 = vld [vmem:[#allocation8 + $0x8] sm:$0xff] }
  0x66   :  { %836 = vmatpush3.bf16.msra.mxu0 %v833_v8  ;;  %866 = vmatprep.subr.bf16.mxu1 %v865_v23  ;;  %v221_v48 = vld [vmem:[#allocation7 + $0x78] sm:$0xff]  ;;  %v343_v52 = vld [vmem:[#allocation8 + $0x10] sm:$0xff]  ;;  %v889_v53 = vpack.c.bf16 %v342_v51, %v341_v50  ;;  %v345_v56 = vld [vmem:[#allocation8 + $0x20] sm:$0xff] }
  0x67   :  { %838 = vmatprep.subr.bf16.mxu0 %v837_v20  ;;  %v885_v49 = vpack.c.bf16 %v221_v48, %v220_v47  ;;  %v344_v54 = vld [vmem:[#allocation8 + $0x18] sm:$0xff]  ;;  %v346_v57 = vld [vmem:[#allocation8 + $0x28] sm:$0xff]  ;;  %v347_v59 = vld [vmem:[#allocation8 + $0x30] sm:$0xff] }
  0x68   :  { %v893_v55 = vpack.c.bf16 %v344_v54, %v343_v52  ;;  %v897_v58 = vpack.c.bf16 %v346_v57, %v345_v56  ;;  %v348_v60 = vld [vmem:[#allocation8 + $0x38] sm:$0xff]  ;;  %v349_v62 = vld [vmem:[#allocation8 + $0x40] sm:$0xff]  ;;  %v350_v63 = vld [vmem:[#allocation8 + $0x48] sm:$0xff] }
  0x69   :  { %868 = vmatpush3.bf16.msra.mxu1 %v865_v23  ;;  %v901_v61 = vpack.c.bf16 %v348_v60, %v347_v59  ;;  %v905_v0 = vpack.c.bf16 %v350_v63, %v349_v62  ;;  %v351_v1 = vld [vmem:[#allocation8 + $0x50] sm:$0xff]  ;;  %v352_v2 = vld [vmem:[#allocation8 + $0x58] sm:$0xff]  ;;  %v353_v4 = vld [vmem:[#allocation8 + $0x60] sm:$0xff] }
  0x6a   :  { %840 = vmatpush3.bf16.msra.mxu0 %v837_v20  ;;  %870 = vmatprep.subr.bf16.mxu1 %v869_v29  ;;  %v909_v3 = vpack.c.bf16 %v352_v2, %v351_v1  ;;  %v354_v5 = vld [vmem:[#allocation8 + $0x68] sm:$0xff]  ;;  %v609_v7 = vld [vmem:[%s1343_s2] ss:$0 sm:$0xff]  ;;  %v356_v15 = vld [vmem:[#allocation8 + $0x78] sm:$0xff] }
  0x6b   :  { %842 = vmatprep.subr.bf16.mxu0 %v841_v26  ;;  %v913_v6 = vpack.c.bf16 %v354_v5, %v353_v4  ;;  %v355_v14 = vld [vmem:[#allocation8 + $0x70] sm:$0xff]  ;;  %v441_v17 = vld [vmem:[#allocation10] sm:$0xff]  ;;  %v442_v18 = vld [vmem:[#allocation10 + $0x8] sm:$0xff] }
  0x6c   :  { %v917_v16 = vpack.c.bf16 %v356_v15, %v355_v14  ;;  %v443_v19 = vld [vmem:[#allocation10 + $0x10] sm:$0xff]  ;;  %v921_v20 = vpack.c.bf16 %v442_v18, %v441_v17  ;;  %v444_v21 = vld [vmem:[#allocation10 + $0x18] sm:$0xff]  ;;  %v445_v23 = vld [vmem:[#allocation10 + $0x20] sm:$0xff] }
  0x6d   :  { %872 = vmatpush3.bf16.msra.mxu1 %v869_v29  ;;  %v925_v22 = vpack.c.bf16 %v444_v21, %v443_v19  ;;  %v446_v24 = vld [vmem:[#allocation10 + $0x28] sm:$0xff]  ;;  %v448_v27 = vld [vmem:[#allocation10 + $0x38] sm:$0xff]  ;;  %v449_v29 = vld [vmem:[#allocation10 + $0x40] sm:$0xff] }
  0x6e   :  { %844 = vmatpush3.bf16.msra.mxu0 %v841_v26  ;;  %874 = vmatprep.subr.bf16.mxu1 %v873_v35  ;;  %v929_v25 = vpack.c.bf16 %v446_v24, %v445_v23  ;;  %v447_v26 = vld [vmem:[#allocation10 + $0x30] sm:$0xff]  ;;  %v450_v30 = vld [vmem:[#allocation10 + $0x48] sm:$0xff]  ;;  %v452_v33 = vld [vmem:[#allocation10 + $0x58] sm:$0xff] }
  0x6f   :  { %846 = vmatprep.subr.bf16.mxu0 %v845_v32  ;;  %v933_v28 = vpack.c.bf16 %v448_v27, %v447_v26  ;;  %v937_v31 = vpack.c.bf16 %v450_v30, %v449_v29  ;;  %v454_v36 = vld [vmem:[#allocation10 + $0x68] sm:$0xff]  ;;  %v611_v14 = vld [vmem:[%s1347_s6] ss:$0 sm:$0xff] }
  0x71   :  { %876 = vmatpush3.bf16.msra.mxu1 %v873_v35  ;;  %v453_v35 = vld [vmem:[#allocation10 + $0x60] sm:$0xff] }
  0x72   :  { %848 = vmatpush3.bf16.msra.mxu0 %v845_v32  ;;  %878 = vmatprep.subr.bf16.mxu1 %v877_v41  ;;  %v451_v32 = vld [vmem:[#allocation10 + $0x50] sm:$0xff]  ;;  %v945_v37 = vpack.c.bf16 %v454_v36, %v453_v35 }
  0x73   :  { %850 = vmatprep.subr.bf16.mxu0 %v849_v38  ;;  %v941_v34 = vpack.c.bf16 %v452_v33, %v451_v32 }
  0x75   :  { %880 = vmatpush3.bf16.msra.mxu1 %v877_v41 }
  0x76   :  { %852 = vmatpush3.bf16.msra.mxu0 %v849_v38  ;;  %882 = vmatprep.subr.bf16.mxu1 %v881_v45  ;;  %v610_v38 = vld [vmem:[%s1345_s4] ss:$0 sm:$0xff] }
  0x77   :  { %854 = vmatprep.subr.bf16.mxu0 %v853_v44 }
  0x79   :  { %884 = vmatpush3.bf16.msra.mxu1 %v881_v45 }
  0x7a   :  { %856 = vmatpush3.bf16.msra.mxu0 %v853_v44  ;;  %886 = vmatprep.subr.bf16.mxu1 %v885_v49 }
  0x7b   :  { %890 = vmatprep.subr.bf16.mxu0 %v889_v53 }
  0x7d   :  { %718 = vmatmul.mubr.f32.vlgmr.msra.gmra.mrb[0].mxu0 %v105_v46  ;;  %888 = vmatpush3.bf16.msra.mxu1 %v885_v49 }
  0x7e   :  { %892 = vmatpush3.bf16.msra.mxu0 %v889_v53  ;;  %922 = vmatprep.subr.bf16.mxu1 %v921_v20 }
  0x7f   :  { %894 = vmatprep.subr.bf16.mxu0 %v893_v55 }
  0x82   :  { %896 = vmatpush3.bf16.msra.mxu0 %v893_v55  ;;  %v304_v55 = vlaneseq }
  0x83   :  { %898 = vmatprep.subr.bf16.mxu0 %v897_v58 }
  0x84   :  { %v1301_v59 = vand.u32 127, %v304_v55 }
  0x86   :  { %900 = vmatpush3.bf16.msra.mxu0 %v897_v58  ;;  %vm306_vm1 = vcmp.ge.s32.totalorder %v1301_v59, 8 }
  0x87   :  { %902 = vmatprep.subr.bf16.mxu0 %v901_v61 }
  0x8a   :  { %904 = vmatpush3.bf16.msra.mxu0 %v901_v61 }
  0x8b   :  { %906 = vmatprep.subr.bf16.mxu0 %v905_v0 }
  0x8e   :  { %908 = vmatpush3.bf16.msra.mxu0 %v905_v0 }
  0x8f   :  { %910 = vmatprep.subr.bf16.mxu0 %v909_v3 }
  0x92   :  { %912 = vmatpush3.bf16.msra.mxu0 %v909_v3 }
  0x93   :  { %914 = vmatprep.subr.bf16.mxu0 %v913_v6 }
  0x96   :  { %916 = vmatpush3.bf16.msra.mxu0 %v913_v6 }
  0x97   :  { %918 = vmatprep.subr.bf16.mxu0 %v917_v16 }
  0x9a   :  { %920 = vmatpush3.bf16.msra.mxu0 %v917_v16 }
 0x150   :  { %v719_v8 = vpop.f32.mrb[0].mxu0 }
 0x151   :  { %v201_v9 = vadd.f32 %v719_v8, %v609_v7  ;;  %v195_v10 = vpop.f32.mrb[1].mxu0 }
 0x152   :  { %v196_v11 = vadd.f32 %v609_v7, %v195_v10 }
 0x153   :  { %v205_v13 = vmax.f32 %v201_v9, 0.0 }
 0x154   :  { %v204_v12 = vmax.f32 %v196_v11, 0.0  ;;  %v455_v11 = vld [vmem:[#allocation10 + $0x70] sm:$0xff] }
 0x156   :  { %752 = vmatprep.mubr.f32.mxu1 %v204_v12  ;;  %v456_v12 = vld [vmem:[#allocation10 + $0x78] sm:$0xff] }
 0x157   :  { %753 = vmatmul.mubr.f32.vlgmr.msra.gmra.mrb[0].mxu1 %v205_v13  ;;  %v949_v13 = vpack.c.bf16 %v456_v12, %v455_v11 }
 0x158   :  { %924 = vmatpush3.bf16.msra.mxu1 %v921_v20 }
 0x159   :  { %926 = vmatprep.subr.bf16.mxu1 %v925_v22 }
 0x15c   :  { %928 = vmatpush3.bf16.msra.mxu1 %v925_v22 }
 0x15d   :  { %930 = vmatprep.subr.bf16.mxu1 %v929_v25 }
 0x160   :  { %932 = vmatpush3.bf16.msra.mxu1 %v929_v25 }
 0x161   :  { %934 = vmatprep.subr.bf16.mxu1 %v933_v28 }
 0x164   :  { %936 = vmatpush3.bf16.msra.mxu1 %v933_v28 }
 0x165   :  { %938 = vmatprep.subr.bf16.mxu1 %v937_v31 }
 0x168   :  { %940 = vmatpush3.bf16.msra.mxu1 %v937_v31 }
 0x169   :  { %942 = vmatprep.subr.bf16.mxu1 %v941_v34 }
 0x16c   :  { %944 = vmatpush3.bf16.msra.mxu1 %v941_v34 }
 0x16d   :  { %946 = vmatprep.subr.bf16.mxu1 %v945_v37 }
 0x170   :  { %948 = vmatpush3.bf16.msra.mxu1 %v945_v37 }
 0x171   :  { %950 = vmatprep.subr.bf16.mxu1 %v949_v13 }
 0x174   :  { %952 = vmatpush3.bf16.msra.mxu1 %v949_v13 }
 0x22a   :  { %v754_v39 = vpop.f32.mrb[0].mxu1 }
 0x22b   :  { %v301_v40 = vadd.f32 %v754_v39, %v610_v38  ;;  %v295_v41 = vpop.f32.mrb[1].mxu1 }
 0x22c   :  { %v296_v42 = vadd.f32 %v610_v38, %v295_v41 }
 0x22d   :  { %v310_v43 = vand.u32 2147483647, %v301_v40  ;;  %v308_v1 = vmax.f32 %v301_v40, 0.0 }
 0x22e   :  { %v309_v44 = vand.u32 2147483647, %v296_v42  ;;  %787 = vmatprep.mubr.f32.mxu0 %v296_v42  ;;  %v307_v4 = vmax.f32 %v296_v42, 0.0 }
 0x22f   :  { %v312_v45 = vsub.f32 0.0, %v310_v43  ;;  %788 = vmatmul.mubr.f32.vlgmr.msra.gmra.mrb[2].mxu0 %v301_v40 }
 0x230   :  { %v311_v46 = vsub.f32 0.0, %v309_v44 }
 0x231   :  { %v315_v47 = vmul.f32 1.442695, %v312_v45 }
 0x232   :  { %v313_v48 = vmul.f32 1.442695, %v311_v46 }
 0x233   :  { %962 = vpow2.f32 %v315_v47 }
 0x234   :  { %964 = vpow2.f32 %v313_v48 }
 0x23d   :  { %v963_v49 = vpop.eup %962 }
 0x23e   :  { %v965_v50 = vpop.eup %964  ;;  %v326_v51 = vadd.f32 1.0, %v963_v49  ;;  %v329_v53 = vmul.f32 -0.5, %v963_v49  ;;  %v332_v58 = vand.u32 2147483647, %v963_v49 }
 0x23f   :  { %v317_v52 = vadd.f32 1.0, %v965_v50  ;;  %v320_v54 = vmul.f32 -0.5, %v965_v50  ;;  %v323_v60 = vand.u32 2147483647, %v965_v50 }
 0x240   :  { %966 = vlog2.f32 %v326_v51  ;;  %v330_v56 = vadd.f32 1.0, %v329_v53  ;;  %vm333_vm0 = vcmp.lt.f32.partialorder %v332_v58, 0.0004427343 }
 0x241   :  { %968 = vlog2.f32 %v317_v52  ;;  %v321_v57 = vadd.f32 1.0, %v320_v54  ;;  %vm324_vm2 = vcmp.lt.f32.partialorder %v323_v60, 0.0004427343 }
 0x242   :  { %v331_v0 = vmul.f32 %v963_v49, %v330_v56 }
 0x243   :  { %v322_v3 = vmul.f32 %v965_v50, %v321_v57 }
 0x24a   :  { %v967_v61 = vpop.eup %966 }
 0x24b   :  { %v969_v62 = vpop.eup %968  ;;  %v328_v63 = vmul.f32 0.6931472, %v967_v61 }
 0x24c   :  { %v319_v2 = vmul.f32 0.6931472, %v969_v62 }
 0x24d   :  { %v334_v5 = vsel %vm333_vm0, %v331_v0, %v328_v63 }
 0x24e   :  { %v325_v6 = vsel %vm324_vm2, %v322_v3, %v319_v2  ;;  %v336_v7 = vadd.f32 %v334_v5, %v308_v1 }
 0x24f   :  { %v335_v8 = vadd.f32 %v325_v6, %v307_v4 }
 0x250   :  { %v338_v9 = vsel %vm306_vm1, %v336_v7, %v301_v40 }
 0x251   :  { %v337_v10 = vsel %vm306_vm1, %v335_v8, %v296_v42  ;;  %340 = vst [vmem:[#allocation11 + $0x8] sm:$0xff] %v338_v9 }
 0x252   :  { %339 = vst [vmem:[#allocation11] sm:$0xff] %v337_v10 }
 0x302   :  { %v789_v15 = vpop.f32.mrb[2].mxu0 }
 0x303   :  { %v436_v16 = vadd.f32 %v789_v15, %v611_v14  ;;  %v430_v17 = vpop.f32.mrb[3].mxu0 }
 0x304   :  { %v431_v18 = vadd.f32 %v611_v14, %v430_v17 }
 0x305   :  { %v440_v20 = vmax.f32 %v436_v16, 0.0 }
 0x306   :  { %v439_v19 = vmax.f32 %v431_v18, 0.0 }
 0x308   :  { %822 = vmatprep.mubr.f32.mxu1 %v439_v19 }
 0x309   :  { %823 = vmatmul.mubr.f32.vlgmr.msra.gmra.mrb[2].mxu1 %v440_v20 }
 0x30a   :  { %1099 = shalt.err (!%p1096_p2)
}
 0x30b   :  { %s1100_s21 = scalar_lea.hbm %s1350_s9, 256 }
 0x30c   :  { %p1101_p3 = scmp.ne.s32.totalorder %s1350_s9, %s1100_s21  ;;  %p1104_p4 = scmp.lt.u32.totalorder %s1100_s21, %s1350_s9 }
 0x30e   :  { %p1106_p5 = pnand %p1104_p4, %p1101_p3 }
 0x310   :  { %1109 = shalt.err (!%p1106_p5)
}
 0x311   :  { %585 = dma.vmem_to_hbm [thread:$0]  %s580_s1, 256, %s1350_s9, [#allocation4], %s1144_s25, %s1144_s25, %s1145_s26   ;;  %vm539_vm5 = vcmp.ge.s32.totalorder %v1301_v59, 32 }
 0x312   :  { %v612_v21 = vld [vmem:[%s1349_s8] ss:$0 sm:$0xff]  ;;  %s1150_s8 = smov [#allocation12]  }
 0x313   :  { %s591_s9 = sshll.u32 %s1150_s8, 4  ;;  %s592_s9 = int_to_ptr.vmem [resolvable:$true] %s591_s9 }
 0x314   :  { %s1110_s11 = scalar_lea.vmem %s592_s9, 256  ;;  %p1115_p7 = scmp.lt.s32.totalorder %s592_s9, %s592_s9 }
 0x315   :  { %p1111_p6 = scmp.ne.s32.totalorder %s592_s9, %s1110_s11  ;;  %p1116_p8 = scmp.lt.s32.totalorder %s1110_s11, %s1110_s11 }
 0x317   :  { %p1117_p9 = por %p1116_p8, %p1115_p7 }
 0x319   :  { %p1118_p10 = pnand %p1117_p9, %p1111_p6 }
 0x3dc   :  { %v824_v22 = vpop.f32.mrb[2].mxu1 }
 0x3dd   :  { %v536_v23 = vadd.f32 %v824_v22, %v612_v21  ;;  %v530_v24 = vpop.f32.mrb[3].mxu1 }
 0x3de   :  { %v531_v25 = vadd.f32 %v612_v21, %v530_v24 }
 0x3df   :  { %v543_v26 = vand.u32 2147483647, %v536_v23  ;;  %v541_v46 = vmax.f32 %v536_v23, 0.0 }
 0x3e0   :  { %v542_v27 = vand.u32 2147483647, %v531_v25  ;;  %v540_v50 = vmax.f32 %v531_v25, 0.0 }
 0x3e1   :  { %v545_v28 = vsub.f32 0.0, %v543_v26 }
 0x3e2   :  { %v544_v29 = vsub.f32 0.0, %v542_v27 }
 0x3e3   :  { %v548_v30 = vmul.f32 1.442695, %v545_v28 }
 0x3e4   :  { %v546_v31 = vmul.f32 1.442695, %v544_v29 }
 0x3e5   :  { %970 = vpow2.f32 %v548_v30 }
 0x3e6   :  { %972 = vpow2.f32 %v546_v31 }
 0x3ef   :  { %v971_v32 = vpop.eup %970 }
 0x3f0   :  { %v973_v33 = vpop.eup %972  ;;  %v559_v34 = vadd.f32 1.0, %v971_v32  ;;  %v562_v36 = vmul.f32 -0.5, %v971_v32  ;;  %v565_v39 = vand.u32 2147483647, %v971_v32 }
 0x3f1   :  { %v550_v35 = vadd.f32 1.0, %v973_v33  ;;  %v553_v37 = vmul.f32 -0.5, %v973_v33  ;;  %v556_v41 = vand.u32 2147483647, %v973_v33 }
 0x3f2   :  { %974 = vlog2.f32 %v559_v34  ;;  %v563_v38 = vadd.f32 1.0, %v562_v36  ;;  %vm566_vm3 = vcmp.lt.f32.partialorder %v565_v39, 0.0004427343 }
 0x3f3   :  { %976 = vlog2.f32 %v550_v35  ;;  %v554_v40 = vadd.f32 1.0, %v553_v37  ;;  %vm557_vm4 = vcmp.lt.f32.partialorder %v556_v41, 0.0004427343 }
 0x3f4   :  { %v564_v45 = vmul.f32 %v971_v32, %v563_v38 }
 0x3f5   :  { %v555_v48 = vmul.f32 %v973_v33, %v554_v40 }
 0x3fc   :  { %v975_v42 = vpop.eup %974 }
 0x3fd   :  { %v977_v43 = vpop.eup %976  ;;  %v561_v44 = vmul.f32 0.6931472, %v975_v42 }
 0x3fe   :  { %v552_v47 = vmul.f32 0.6931472, %v977_v43 }
 0x3ff   :  { %v567_v49 = vsel %vm566_vm3, %v564_v45, %v561_v44 }
 0x400   :  { %v569_v51 = vadd.f32 %v567_v49, %v541_v46  ;;  %v558_v52 = vsel %vm557_vm4, %v555_v48, %v552_v47 }
 0x401   :  { %v568_v53 = vadd.f32 %v558_v52, %v540_v50 }
 0x402   :  { %v571_v54 = vsel %vm539_vm5, %v569_v51, %v536_v23 }
 0x403   :  { %v570_v55 = vsel %vm539_vm5, %v568_v53, %v531_v25  ;;  %573 = vst [vmem:[#allocation12 + $0x8] sm:$0xff] %v571_v54 }
 0x404   :  { %572 = vst [vmem:[#allocation12] sm:$0xff] %v570_v55 }
 0x405   :  { %1121 = shalt.err (!%p1118_p10)
}
 0x406   :  { %s1122_s12 = scalar_lea.hbm %s1351_s10, 256 }
 0x407   :  { %p1123_p11 = scmp.ne.s32.totalorder %s1351_s10, %s1122_s12  ;;  %p1126_p12 = scmp.lt.u32.totalorder %s1122_s12, %s1351_s10 }
 0x409   :  { %p1128_p13 = pnand %p1126_p12, %p1123_p11 }
 0x40b   :  { %1131 = shalt.err (!%p1128_p13)
}
 0x40c   :  { %597 = dma.vmem_to_hbm [thread:$0]  %s592_s9, 256, %s1351_s10, [#allocation13], %s1144_s25, %s1144_s25, %s1145_s26  }
 0x40d   :  { %1138 = dma.done.wait [#allocation4], 256  }
 0x40e   :  { %1139 = vsyncadd [#allocation4], 4294967040 }
 0x40f   :  { %1140 = dma.done.wait [#allocation13], 256  }
 0x410   :  { %1141 = vsyncadd [#allocation13], 4294967040 }
 0x411   :  { %604 = vsyncpa [#allocation3], 1 }
 0x412   :  { %605 = vsyncpa [#allocation6], 1 }
 0x413   :  { %606 = vsyncpa [#allocation9], 1 }
 0x414   :  { %607 = vsyncpa [#allocation4], 1 }
 0x415   :  { %608 = vsyncpa [#allocation13], 1 }

</bundles_post_ra>
